<compile_context>
chip_gen: v7x
topology: tpu7x:2x2x1
jax: 0.10.0
libtpu: 0.0.40
codegen_flags: <defaults>
</compile_context>

<pallas_src>
import math
from functools import partial

import jax
import jax.numpy as jnp
from jax.experimental import pallas as pl
from jax.experimental.pallas import tpu as pltpu


# ---------------------------------------------------------------------------
# in-kernel helpers (traced into the kernel body)
# ---------------------------------------------------------------------------
def _layernorm(v, w, b, eps=1e-5):
    mu = jnp.mean(v, axis=-1, keepdims=True)
    var = jnp.mean((v - mu) ** 2, axis=-1, keepdims=True)
    return (v - mu) * jax.lax.rsqrt(var + eps) * w + b


def _erf(x):
    # Abramowitz & Stegun 7.1.26: max abs error ~1.5e-7, built from ops
    # guaranteed to lower in Mosaic (exp, abs, where, fma).
    p = 0.3275911
    a1, a2, a3, a4, a5 = (0.254829592, -0.284496736, 1.421413741,
                          -1.453152027, 1.061405429)
    ax = jnp.abs(x)
    t = 1.0 / (1.0 + p * ax)
    poly = ((((a5 * t + a4) * t + a3) * t + a2) * t + a1) * t
    pos = 1.0 - poly * jnp.exp(-ax * ax)
    return jnp.where(x < 0, -pos, pos)


def _gelu_exact(x):
    # PyTorch nn.GELU() default (erf-based, NOT tanh approximation).
    return 0.5 * x * (1.0 + _erf(x * (1.0 / math.sqrt(2.0))))


# ---------------------------------------------------------------------------
# kernel: one batch element per grid step
# ---------------------------------------------------------------------------
def self_attention_kernel(x_ref,
                          ln1_w, ln1_b,
                          w_qkv, b_qkv, wo, bo,
                          ln2_w, ln2_b,
                          w1, b1, w2, b2,
                          o_ref, *, num_heads):
    S, D = x_ref.shape[1], x_ref.shape[2]
    hd = D // num_heads
    mm = w_qkv.dtype            # MXU input dtype (f32 or bf16); accum stays f32

    x = x_ref[0].astype(jnp.float32)                       # (S, D)

    # --- LayerNorm(x)  (f32 statistics)
    x_ln = _layernorm(x, ln1_w[...], ln1_b[...])

    # --- fused QKV projection (one MXU pass, N = 3D).
    # 1/sqrt(hd) is already folded into the Q columns of w_qkv / b_qkv.
    qkv = jnp.dot(x_ln.astype(mm), w_qkv[...],
                  preferred_element_type=jnp.float32) + b_qkv[...]
    q = qkv[:, :D]
    k = qkv[:, D:2 * D]
    v = qkv[:, 2 * D:]

    # --- multi-head attention as a single batched dot over the head dim.
    qh = jnp.transpose(q.reshape(S, num_heads, hd), (1, 0, 2)).astype(mm)  # (H,S,hd)
    kh = jnp.transpose(k.reshape(S, num_heads, hd), (1, 0, 2)).astype(mm)
    vh = jnp.transpose(v.reshape(S, num_heads, hd), (1, 0, 2)).astype(mm)

    s = jnp.einsum('hqd,hkd->hqk', qh, kh,
                   preferred_element_type=jnp.float32)                    # (H,S,S)
    s = s - jnp.max(s, axis=-1, keepdims=True)
    p = jnp.exp(s)
    p = p * pl.reciprocal(jnp.sum(p, axis=-1, keepdims=True), approx=True)

    ctx = jnp.einsum('hqk,hkd->hqd', p.astype(mm), vh,
                     preferred_element_type=jnp.float32)                  # (H,S,hd)
    attn = jnp.transpose(ctx, (1, 0, 2)).reshape(S, D)                    # (S, D)
    attn = jnp.dot(attn.astype(mm), wo[...],
                   preferred_element_type=jnp.float32) + bo[...]

    # --- residual 1
    av = attn + x

    # --- ff_self: LayerNorm -> Linear -> GELU(exact) -> Linear, residual 2
    h1 = _layernorm(av, ln2_w[...], ln2_b[...])
    h2 = jnp.dot(h1.astype(mm), w1[...],
                 preferred_element_type=jnp.float32) + b1[...]
    h3 = _gelu_exact(h2)
    h4 = jnp.dot(h3.astype(mm), w2[...],
                 preferred_element_type=jnp.float32) + b2[...]

    o_ref[0] = (h4 + av).astype(o_ref.dtype)


# ---------------------------------------------------------------------------
# wrapper
# ---------------------------------------------------------------------------
_WEIGHT_ORDER = ("ln1_w", "ln1_b",
                 "w_qkv", "b_qkv", "wo", "bo",
                 "ln2_w", "ln2_b",
                 "w1", "b1", "w2", "b2")


def self_attention(x, params, num_heads=8, matmul_dtype=jnp.float32):
    B, S, D = x.shape
    assert D % num_heads == 0
    hd = D // num_heads
    scale = 1.0 / math.sqrt(hd)

    # Fuse QKV (fold the attention scale into the Q columns once, on the host).
    w_qkv = jnp.concatenate(
        [params["wq"] * scale, params["wk"], params["wv"]], axis=1)        # (D, 3D)
    b_qkv = jnp.concatenate(
        [params["bq"] * scale, params["bk"], params["bv"]], axis=1)        # (1, 3D)

    md = matmul_dtype
    weights = {
        "ln1_w": params["ln1_w"], "ln1_b": params["ln1_b"],
        "w_qkv": w_qkv.astype(md), "b_qkv": b_qkv,
        "wo": params["wo"].astype(md), "bo": params["bo"],
        "ln2_w": params["ln2_w"], "ln2_b": params["ln2_b"],
        "w1": params["w1"].astype(md), "b1": params["b1"],
        "w2": params["w2"].astype(md), "b2": params["b2"],
    }
    ws = [weights[n] for n in _WEIGHT_ORDER]

    # Grid-invariant weights: single resident VMEM copy (no double-buffering).
    vmem_spec = pl.BlockSpec(memory_space=pltpu.MemorySpace.VMEM)

    flops = int(B * (12 * S * D * D + 4 * S * S * D))
    transcendentals = int(B * (num_heads * S * S + S * D + 2 * S))
    bytes_accessed = int(2 * B * S * D * 4
                         + sum(int(w.size) * w.dtype.itemsize for w in ws))

    return pl.pallas_call(
        partial(self_attention_kernel, num_heads=num_heads),
        out_shape=jax.ShapeDtypeStruct((B, S, D), x.dtype),
        grid=(B,),
        in_specs=[pl.BlockSpec((1, S, D), lambda b: (b, 0, 0))]
                 + [vmem_spec] * len(ws),
        out_specs=pl.BlockSpec((1, S, D), lambda b: (b, 0, 0)),
        compiler_params=pltpu.CompilerParams(
            dimension_semantics=("parallel",),
            vmem_limit_bytes=32 * 1024 * 1024),
        cost_estimate=pl.CostEstimate(flops=flops,
                                      transcendentals=transcendentals,
                                      bytes_accessed=bytes_accessed),
    )(x, *ws)


# ---------------------------------------------------------------------------
# deterministic synthetic parameters (shapes dictated by the nn.Module)
# ---------------------------------------------------------------------------
def make_params(key, D):
    ks = jax.random.split(key, 16)
    n = lambda k, shape, s=0.1: (s * jax.random.normal(k, shape)).astype(jnp.float32)
    return {
        # ln: LayerNorm([D])
        "ln1_w": (1.0 + n(ks[0], (1, D))), "ln1_b": n(ks[1], (1, D)),
        # mha in_proj (stored as W^T so kernel does x @ W_t + b)
        "wq": n(ks[2], (D, D)), "bq": n(ks[3], (1, D), 0.02),
        "wk": n(ks[4], (D, D)), "bk": n(ks[5], (1, D), 0.02),
        "wv": n(ks[6], (D, D)), "bv": n(ks[7], (1, D), 0.02),
        # mha out_proj
        "wo": n(ks[8], (D, D)), "bo": n(ks[9], (1, D), 0.02),
        # ff_self: LayerNorm([D]), Linear(D,D), GELU, Linear(D,D)
        "ln2_w": (1.0 + n(ks[10], (1, D))), "ln2_b": n(ks[11], (1, D)),
        "w1": n(ks[12], (D, D)), "b1": n(ks[13], (1, D), 0.02),
        "w2": n(ks[14], (D, D)), "b2": n(ks[15], (1, D), 0.02),
    }


# pure-JAX reference (true erf GELU, as in PyTorch nn.GELU())
def reference(x, P, num_heads=8):
    def ln(v, w, b):
        mu = v.mean(-1, keepdims=True)
        var = ((v - mu) ** 2).mean(-1, keepdims=True)
        return (v - mu) / jnp.sqrt(var + 1e-5) * w + b

    B, S, D = x.shape
    hd = D // num_heads
    x_ln = ln(x, P["ln1_w"][0], P["ln1_b"][0])
    q = x_ln @ P["wq"] + P["bq"][0]
    k = x_ln @ P["wk"] + P["bk"][0]
    v = x_ln @ P["wv"] + P["bv"][0]
    split = lambda t: t.reshape(B, S, num_heads, hd).transpose(0, 2, 1, 3)
    qh, kh, vh = split(q), split(k), split(v)
    s = (qh @ kh.transpose(0, 1, 3, 2)) / math.sqrt(hd)
    p = jax.nn.softmax(s, axis=-1)
    o = (p @ vh).transpose(0, 2, 1, 3).reshape(B, S, D)
    attn = o @ P["wo"] + P["bo"][0]
    av = attn + x
    h1 = ln(av, P["ln2_w"][0], P["ln2_b"][0])
    h2 = h1 @ P["w1"] + P["b1"][0]
    h3 = jax.nn.gelu(h2, approximate=False)
    h4 = h3 @ P["w2"] + P["b2"][0]
    return h4 + av


if __name__ == "__main__":
    B, S, D, H = 2, 8, 32, 8          # batch=2, seq=8, h_size=32, 8 heads
    key = jax.random.PRNGKey(0)
    kx, kp = jax.random.split(key)
    x = jax.random.normal(kx, (B, S, D), dtype=jnp.float32)
    params = make_params(kp, D)

    ref = reference(x, params, num_heads=H)

    # f32-MXU path (softmax denom via approx reciprocal -> slightly looser tol)
    out = jax.block_until_ready(self_attention(x, params, num_heads=H))
    assert out.shape == (B, S, D) and out.dtype == jnp.float32
    assert jnp.allclose(out, ref, atol=2e-3, rtol=2e-3), (
        f"f32 max abs err {jnp.max(jnp.abs(out - ref))}")

    # bf16-MXU path (weights/activation casts at the dot sites, f32 elsewhere)
    out_bf16 = jax.block_until_ready(
        self_attention(x, params, num_heads=H, matmul_dtype=jnp.bfloat16))
    assert jnp.allclose(out_bf16, ref, atol=6e-2, rtol=6e-2), (
        f"bf16 max abs err {jnp.max(jnp.abs(out_bf16 - ref))}")

    print("KERNEL_OK")
</pallas_src>

<mosaic_0001>
module attributes {stable_mosaic.version = 11 : i64} {
  func.func @self_attention_kernel(%arg0: i32, %arg1: memref<1x8x32xf32, #tpu.memory_space<vmem>>, %arg2: memref<1x32xf32, #tpu.memory_space<vmem>>, %arg3: memref<1x32xf32, #tpu.memory_space<vmem>>, %arg4: memref<32x96xf32, #tpu.memory_space<vmem>>, %arg5: memref<1x96xf32, #tpu.memory_space<vmem>>, %arg6: memref<32x32xf32, #tpu.memory_space<vmem>>, %arg7: memref<1x32xf32, #tpu.memory_space<vmem>>, %arg8: memref<1x32xf32, #tpu.memory_space<vmem>>, %arg9: memref<1x32xf32, #tpu.memory_space<vmem>>, %arg10: memref<32x32xf32, #tpu.memory_space<vmem>>, %arg11: memref<1x32xf32, #tpu.memory_space<vmem>>, %arg12: memref<32x32xf32, #tpu.memory_space<vmem>>, %arg13: memref<1x32xf32, #tpu.memory_space<vmem>>, %arg14: memref<1x8x32xf32, #tpu.memory_space<vmem>>) attributes {dimension_semantics = [#tpu.dimension_semantics<parallel>], iteration_bounds = array<i64: 2>, scalar_prefetch = 0 : i64, scratch_operands = 0 : i64, tpu.core_type = #tpu.core_type<tc>, window_params = [{transform_indices = @transform_0, window_bounds = array<i64: 1, 8, 32>}, {pipeline_mode = #tpu.pipeline_mode<synchronous>, transform_indices = @transform_1, window_bounds = array<i64: 1, 32>}, {pipeline_mode = #tpu.pipeline_mode<synchronous>, transform_indices = @transform_2, window_bounds = array<i64: 1, 32>}, {pipeline_mode = #tpu.pipeline_mode<synchronous>, transform_indices = @transform_3, window_bounds = array<i64: 32, 96>}, {pipeline_mode = #tpu.pipeline_mode<synchronous>, transform_indices = @transform_4, window_bounds = array<i64: 1, 96>}, {pipeline_mode = #tpu.pipeline_mode<synchronous>, transform_indices = @transform_5, window_bounds = array<i64: 32, 32>}, {pipeline_mode = #tpu.pipeline_mode<synchronous>, transform_indices = @transform_6, window_bounds = array<i64: 1, 32>}, {pipeline_mode = #tpu.pipeline_mode<synchronous>, transform_indices = @transform_7, window_bounds = array<i64: 1, 32>}, {pipeline_mode = #tpu.pipeline_mode<synchronous>, transform_indices = @transform_8, window_bounds = array<i64: 1, 32>}, {pipeline_mode = #tpu.pipeline_mode<synchronous>, transform_indices = @transform_9, window_bounds = array<i64: 32, 32>}, {pipeline_mode = #tpu.pipeline_mode<synchronous>, transform_indices = @transform_10, window_bounds = array<i64: 1, 32>}, {pipeline_mode = #tpu.pipeline_mode<synchronous>, transform_indices = @transform_11, window_bounds = array<i64: 32, 32>}, {pipeline_mode = #tpu.pipeline_mode<synchronous>, transform_indices = @transform_12, window_bounds = array<i64: 1, 32>}, {transform_indices = @transform_13, window_bounds = array<i64: 1, 8, 32>}]} {
    %c0 = arith.constant 0 : index
    %c0_0 = arith.constant 0 : index
    %c0_1 = arith.constant 0 : index
    %0 = vector.load %arg1[%c0, %c0_0, %c0_1] : memref<1x8x32xf32, #tpu.memory_space<vmem>>, vector<1x8x32xf32>
    %1 = vector.shape_cast %0 : vector<1x8x32xf32> to vector<8x32xf32>
    %c0_2 = arith.constant 0 : index
    %c0_3 = arith.constant 0 : index
    %2 = vector.load %arg2[%c0_2, %c0_3] : memref<1x32xf32, #tpu.memory_space<vmem>>, vector<1x32xf32>
    %c0_4 = arith.constant 0 : index
    %c0_5 = arith.constant 0 : index
    %3 = vector.load %arg3[%c0_4, %c0_5] : memref<1x32xf32, #tpu.memory_space<vmem>>, vector<1x32xf32>
    %cst = arith.constant dense<0.000000e+00> : vector<8xf32>
    %4 = vector.multi_reduction <add>, %1, %cst [1] : vector<8x32xf32> to vector<8xf32>
    %5 = vector.shape_cast %4 : vector<8xf32> to vector<8x1xf32>
    %cst_6 = arith.constant 3.200000e+01 : f32
    %6 = vector.broadcast %cst_6 : f32 to vector<8x1xf32>
    %7 = arith.divf %5, %6 : vector<8x1xf32>
    %8 = vector.broadcast %7 : vector<8x1xf32> to vector<8x32xf32>
    %9 = arith.subf %1, %8 : vector<8x32xf32>
    %10 = arith.mulf %9, %9 : vector<8x32xf32>
    %cst_7 = arith.constant dense<0.000000e+00> : vector<8xf32>
    %11 = vector.multi_reduction <add>, %10, %cst_7 [1] : vector<8x32xf32> to vector<8xf32>
    %12 = vector.shape_cast %11 : vector<8xf32> to vector<8x1xf32>
    %cst_8 = arith.constant 3.200000e+01 : f32
    %13 = vector.broadcast %cst_8 : f32 to vector<8x1xf32>
    %14 = arith.divf %12, %13 : vector<8x1xf32>
    %15 = vector.broadcast %7 : vector<8x1xf32> to vector<8x32xf32>
    %16 = arith.subf %1, %15 : vector<8x32xf32>
    %cst_9 = arith.constant 9.99999974E-6 : f32
    %17 = vector.broadcast %cst_9 : f32 to vector<8x1xf32>
    %18 = arith.addf %14, %17 : vector<8x1xf32>
    %19 = math.rsqrt %18 : vector<8x1xf32>
    %20 = vector.broadcast %19 : vector<8x1xf32> to vector<8x32xf32>
    %21 = arith.mulf %16, %20 : vector<8x32xf32>
    %22 = vector.broadcast %2 : vector<1x32xf32> to vector<8x32xf32>
    %23 = arith.mulf %21, %22 : vector<8x32xf32>
    %24 = vector.broadcast %3 : vector<1x32xf32> to vector<8x32xf32>
    %25 = arith.addf %23, %24 : vector<8x32xf32>
    %c0_10 = arith.constant 0 : index
    %c0_11 = arith.constant 0 : index
    %26 = vector.load %arg4[%c0_10, %c0_11] : memref<32x96xf32, #tpu.memory_space<vmem>>, vector<32x96xf32>
    %cst_12 = arith.constant dense<0.000000e+00> : vector<8x96xf32>
    %27 = tpu.matmul %25, %26, %cst_12 {dimension_numbers = #tpu.dot_dimension_numbers<[1], [0], [0], [1], [0, 0, 1, 1], [], []>} : vector<8x32xf32>, vector<32x96xf32>, vector<8x96xf32> -> vector<8x96xf32>
    %c0_13 = arith.constant 0 : index
    %c0_14 = arith.constant 0 : index
    %28 = vector.load %arg5[%c0_13, %c0_14] : memref<1x96xf32, #tpu.memory_space<vmem>>, vector<1x96xf32>
    %29 = vector.broadcast %28 : vector<1x96xf32> to vector<8x96xf32>
    %30 = arith.addf %27, %29 : vector<8x96xf32>
    %31 = vector.extract_strided_slice %30 {offsets = [0, 0], sizes = [8, 32], strides = [1, 1]} : vector<8x96xf32> to vector<8x32xf32>
    %32 = vector.extract_strided_slice %30 {offsets = [0, 32], sizes = [8, 32], strides = [1, 1]} : vector<8x96xf32> to vector<8x32xf32>
    %33 = vector.extract_strided_slice %30 {offsets = [0, 64], sizes = [8, 32], strides = [1, 1]} : vector<8x96xf32> to vector<8x32xf32>
    %34 = vector.shape_cast %31 : vector<8x32xf32> to vector<8x8x4xf32>
    %35 = tpu.transpose %34, [1, 0, 2] : vector<8x8x4xf32> -> vector<8x8x4xf32>
    %36 = vector.shape_cast %32 : vector<8x32xf32> to vector<8x8x4xf32>
    %37 = tpu.transpose %36, [1, 0, 2] : vector<8x8x4xf32> -> vector<8x8x4xf32>
    %38 = vector.shape_cast %33 : vector<8x32xf32> to vector<8x8x4xf32>
    %39 = tpu.transpose %38, [1, 0, 2] : vector<8x8x4xf32> -> vector<8x8x4xf32>
    "tpu.trace_start"() <{level = 10 : i32, message = "hqd,hkd->hqk"}> : () -> ()
    %cst_15 = arith.constant dense<0.000000e+00> : vector<8x8x8xf32>
    %40 = tpu.matmul %35, %37, %cst_15 {dimension_numbers = #tpu.dot_dimension_numbers<[2], [2], [1], [1], [0, 0, 0, 1, 1, 1], [0], [0]>} : vector<8x8x4xf32>, vector<8x8x4xf32>, vector<8x8x8xf32> -> vector<8x8x8xf32>
    "tpu.trace_stop"() : () -> ()
    %cst_16 = arith.constant dense<0xFF800000> : vector<8x8xf32>
    %41 = vector.multi_reduction <maximumf>, %40, %cst_16 [2] : vector<8x8x8xf32> to vector<8x8xf32>
    %42 = vector.shape_cast %41 : vector<8x8xf32> to vector<8x8x1xf32>
    %43 = vector.broadcast %42 : vector<8x8x1xf32> to vector<8x8x8xf32>
    %44 = arith.subf %40, %43 : vector<8x8x8xf32>
    %45 = math.exp %44 : vector<8x8x8xf32>
    %cst_17 = arith.constant dense<0.000000e+00> : vector<8x8xf32>
    %46 = vector.multi_reduction <add>, %45, %cst_17 [2] : vector<8x8x8xf32> to vector<8x8xf32>
    %47 = vector.shape_cast %46 : vector<8x8xf32> to vector<8x8x1xf32>
    %48 = tpu.reciprocal %47 {approx = true} : vector<8x8x1xf32> -> vector<8x8x1xf32>
    %49 = vector.broadcast %48 : vector<8x8x1xf32> to vector<8x8x8xf32>
    %50 = arith.mulf %45, %49 : vector<8x8x8xf32>
    "tpu.trace_start"() <{level = 10 : i32, message = "hqk,hkd->hqd"}> : () -> ()
    %cst_18 = arith.constant dense<0.000000e+00> : vector<8x8x4xf32>
    %51 = tpu.matmul %50, %39, %cst_18 {dimension_numbers = #tpu.dot_dimension_numbers<[2], [1], [1], [2], [0, 0, 0, 1, 1, 2], [0], [0]>} : vector<8x8x8xf32>, vector<8x8x4xf32>, vector<8x8x4xf32> -> vector<8x8x4xf32>
    "tpu.trace_stop"() : () -> ()
    %52 = tpu.transpose %51, [1, 0, 2] : vector<8x8x4xf32> -> vector<8x8x4xf32>
    %53 = vector.shape_cast %52 : vector<8x8x4xf32> to vector<8x32xf32>
    %c0_19 = arith.constant 0 : index
    %c0_20 = arith.constant 0 : index
    %54 = vector.load %arg6[%c0_19, %c0_20] : memref<32x32xf32, #tpu.memory_space<vmem>>, vector<32x32xf32>
    %cst_21 = arith.constant dense<0.000000e+00> : vector<8x32xf32>
    %55 = tpu.matmul %53, %54, %cst_21 {dimension_numbers = #tpu.dot_dimension_numbers<[1], [0], [0], [1], [0, 0, 1, 1], [], []>} : vector<8x32xf32>, vector<32x32xf32>, vector<8x32xf32> -> vector<8x32xf32>
    %c0_22 = arith.constant 0 : index
    %c0_23 = arith.constant 0 : index
    %56 = vector.load %arg7[%c0_22, %c0_23] : memref<1x32xf32, #tpu.memory_space<vmem>>, vector<1x32xf32>
    %57 = vector.broadcast %56 : vector<1x32xf32> to vector<8x32xf32>
    %58 = arith.addf %55, %57 : vector<8x32xf32>
    %59 = arith.addf %58, %1 : vector<8x32xf32>
    %c0_24 = arith.constant 0 : index
    %c0_25 = arith.constant 0 : index
    %60 = vector.load %arg8[%c0_24, %c0_25] : memref<1x32xf32, #tpu.memory_space<vmem>>, vector<1x32xf32>
    %c0_26 = arith.constant 0 : index
    %c0_27 = arith.constant 0 : index
    %61 = vector.load %arg9[%c0_26, %c0_27] : memref<1x32xf32, #tpu.memory_space<vmem>>, vector<1x32xf32>
    %cst_28 = arith.constant dense<0.000000e+00> : vector<8xf32>
    %62 = vector.multi_reduction <add>, %59, %cst_28 [1] : vector<8x32xf32> to vector<8xf32>
    %63 = vector.shape_cast %62 : vector<8xf32> to vector<8x1xf32>
    %cst_29 = arith.constant 3.200000e+01 : f32
    %64 = vector.broadcast %cst_29 : f32 to vector<8x1xf32>
    %65 = arith.divf %63, %64 : vector<8x1xf32>
    %66 = vector.broadcast %65 : vector<8x1xf32> to vector<8x32xf32>
    %67 = arith.subf %59, %66 : vector<8x32xf32>
    %68 = arith.mulf %67, %67 : vector<8x32xf32>
    %cst_30 = arith.constant dense<0.000000e+00> : vector<8xf32>
    %69 = vector.multi_reduction <add>, %68, %cst_30 [1] : vector<8x32xf32> to vector<8xf32>
    %70 = vector.shape_cast %69 : vector<8xf32> to vector<8x1xf32>
    %cst_31 = arith.constant 3.200000e+01 : f32
    %71 = vector.broadcast %cst_31 : f32 to vector<8x1xf32>
    %72 = arith.divf %70, %71 : vector<8x1xf32>
    %73 = vector.broadcast %65 : vector<8x1xf32> to vector<8x32xf32>
    %74 = arith.subf %59, %73 : vector<8x32xf32>
    %cst_32 = arith.constant 9.99999974E-6 : f32
    %75 = vector.broadcast %cst_32 : f32 to vector<8x1xf32>
    %76 = arith.addf %72, %75 : vector<8x1xf32>
    %77 = math.rsqrt %76 : vector<8x1xf32>
    %78 = vector.broadcast %77 : vector<8x1xf32> to vector<8x32xf32>
    %79 = arith.mulf %74, %78 : vector<8x32xf32>
    %80 = vector.broadcast %60 : vector<1x32xf32> to vector<8x32xf32>
    %81 = arith.mulf %79, %80 : vector<8x32xf32>
    %82 = vector.broadcast %61 : vector<1x32xf32> to vector<8x32xf32>
    %83 = arith.addf %81, %82 : vector<8x32xf32>
    %c0_33 = arith.constant 0 : index
    %c0_34 = arith.constant 0 : index
    %84 = vector.load %arg10[%c0_33, %c0_34] : memref<32x32xf32, #tpu.memory_space<vmem>>, vector<32x32xf32>
    %cst_35 = arith.constant dense<0.000000e+00> : vector<8x32xf32>
    %85 = tpu.matmul %83, %84, %cst_35 {dimension_numbers = #tpu.dot_dimension_numbers<[1], [0], [0], [1], [0, 0, 1, 1], [], []>} : vector<8x32xf32>, vector<32x32xf32>, vector<8x32xf32> -> vector<8x32xf32>
    %c0_36 = arith.constant 0 : index
    %c0_37 = arith.constant 0 : index
    %86 = vector.load %arg11[%c0_36, %c0_37] : memref<1x32xf32, #tpu.memory_space<vmem>>, vector<1x32xf32>
    %87 = vector.broadcast %86 : vector<1x32xf32> to vector<8x32xf32>
    %88 = arith.addf %85, %87 : vector<8x32xf32>
    %cst_38 = arith.constant 5.000000e-01 : f32
    %89 = vector.broadcast %cst_38 : f32 to vector<8x32xf32>
    %90 = arith.mulf %89, %88 : vector<8x32xf32>
    %cst_39 = arith.constant 0.707106769 : f32
    %91 = vector.broadcast %cst_39 : f32 to vector<8x32xf32>
    %92 = arith.mulf %88, %91 : vector<8x32xf32>
    %93 = math.absf %92 : vector<8x32xf32>
    %cst_40 = arith.constant 0.327591091 : f32
    %94 = vector.broadcast %cst_40 : f32 to vector<8x32xf32>
    %95 = arith.mulf %94, %93 : vector<8x32xf32>
    %cst_41 = arith.constant 1.000000e+00 : f32
    %96 = vector.broadcast %cst_41 : f32 to vector<8x32xf32>
    %97 = arith.addf %96, %95 : vector<8x32xf32>
    %cst_42 = arith.constant 1.000000e+00 : f32
    %98 = vector.broadcast %cst_42 : f32 to vector<8x32xf32>
    %99 = arith.divf %98, %97 : vector<8x32xf32>
    %cst_43 = arith.constant 1.06140542 : f32
    %100 = vector.broadcast %cst_43 : f32 to vector<8x32xf32>
    %101 = arith.mulf %100, %99 : vector<8x32xf32>
    %cst_44 = arith.constant -1.45315206 : f32
    %102 = vector.broadcast %cst_44 : f32 to vector<8x32xf32>
    %103 = arith.addf %101, %102 : vector<8x32xf32>
    %104 = arith.mulf %103, %99 : vector<8x32xf32>
    %cst_45 = arith.constant 1.42141378 : f32
    %105 = vector.broadcast %cst_45 : f32 to vector<8x32xf32>
    %106 = arith.addf %104, %105 : vector<8x32xf32>
    %107 = arith.mulf %106, %99 : vector<8x32xf32>
    %cst_46 = arith.constant -0.284496725 : f32
    %108 = vector.broadcast %cst_46 : f32 to vector<8x32xf32>
    %109 = arith.addf %107, %108 : vector<8x32xf32>
    %110 = arith.mulf %109, %99 : vector<8x32xf32>
    %cst_47 = arith.constant 0.254829586 : f32
    %111 = vector.broadcast %cst_47 : f32 to vector<8x32xf32>
    %112 = arith.addf %110, %111 : vector<8x32xf32>
    %113 = arith.mulf %112, %99 : vector<8x32xf32>
    %cst_48 = arith.constant 0.000000e+00 : f32
    %114 = vector.broadcast %cst_48 : f32 to vector<8x32xf32>
    %115 = arith.subf %114, %93 : vector<8x32xf32>
    %116 = arith.mulf %115, %93 : vector<8x32xf32>
    %117 = math.exp %116 : vector<8x32xf32>
    %118 = arith.mulf %113, %117 : vector<8x32xf32>
    %cst_49 = arith.constant 1.000000e+00 : f32
    %119 = vector.broadcast %cst_49 : f32 to vector<8x32xf32>
    %120 = arith.subf %119, %118 : vector<8x32xf32>
    %cst_50 = arith.constant 0.000000e+00 : f32
    %121 = vector.broadcast %cst_50 : f32 to vector<8x32xf32>
    %122 = arith.cmpf olt, %92, %121 : vector<8x32xf32>
    %cst_51 = arith.constant 0.000000e+00 : f32
    %123 = vector.broadcast %cst_51 : f32 to vector<8x32xf32>
    %124 = arith.subf %123, %120 : vector<8x32xf32>
    %125 = arith.select %122, %124, %120 : vector<8x32xi1>, vector<8x32xf32>
    %cst_52 = arith.constant 1.000000e+00 : f32
    %126 = vector.broadcast %cst_52 : f32 to vector<8x32xf32>
    %127 = arith.addf %126, %125 : vector<8x32xf32>
    %128 = arith.mulf %90, %127 : vector<8x32xf32>
    %c0_53 = arith.constant 0 : index
    %c0_54 = arith.constant 0 : index
    %129 = vector.load %arg12[%c0_53, %c0_54] : memref<32x32xf32, #tpu.memory_space<vmem>>, vector<32x32xf32>
    %cst_55 = arith.constant dense<0.000000e+00> : vector<8x32xf32>
    %130 = tpu.matmul %128, %129, %cst_55 {dimension_numbers = #tpu.dot_dimension_numbers<[1], [0], [0], [1], [0, 0, 1, 1], [], []>} : vector<8x32xf32>, vector<32x32xf32>, vector<8x32xf32> -> vector<8x32xf32>
    %c0_56 = arith.constant 0 : index
    %c0_57 = arith.constant 0 : index
    %131 = vector.load %arg13[%c0_56, %c0_57] : memref<1x32xf32, #tpu.memory_space<vmem>>, vector<1x32xf32>
    %132 = vector.broadcast %131 : vector<1x32xf32> to vector<8x32xf32>
    %133 = arith.addf %130, %132 : vector<8x32xf32>
    %134 = arith.addf %133, %59 : vector<8x32xf32>
    %c0_58 = arith.constant 0 : index
    %c0_59 = arith.constant 0 : index
    %c0_60 = arith.constant 0 : index
    %135 = vector.load %arg14[%c0_58, %c0_59, %c0_60] : memref<1x8x32xf32, #tpu.memory_space<vmem>>, vector<1x8x32xf32>
    %136 = vector.shape_cast %135 : vector<1x8x32xf32> to vector<8x32xf32>
    %137 = vector.shape_cast %134 : vector<8x32xf32> to vector<1x8x32xf32>
    tpu.vector_store %arg14[%c0_58, %c0_59, %c0_60], %137 {strides = array<i32>} : memref<1x8x32xf32, #tpu.memory_space<vmem>>, vector<1x8x32xf32>,
    return
  }
  func.func @transform_0(%arg0: i32) -> (i32, i32, i32) {
    %c0_i32 = arith.constant 0 : i32
    %c0_i32_0 = arith.constant 0 : i32
    %c0_i32_1 = arith.constant 0 : i32
    return %arg0, %c0_i32, %c0_i32_0 : i32, i32, i32
  }
  func.func @transform_1(%arg0: i32) -> (i32, i32) {
    %c0_i32 = arith.constant 0 : i32
    %c0_i32_0 = arith.constant 0 : i32
    %c0_i32_1 = arith.constant 0 : i32
    return %c0_i32, %c0_i32_0 : i32, i32
  }
  func.func @transform_2(%arg0: i32) -> (i32, i32) {
    %c0_i32 = arith.constant 0 : i32
    %c0_i32_0 = arith.constant 0 : i32
    %c0_i32_1 = arith.constant 0 : i32
    return %c0_i32, %c0_i32_0 : i32, i32
  }
  func.func @transform_3(%arg0: i32) -> (i32, i32) {
    %c0_i32 = arith.constant 0 : i32
    %c0_i32_0 = arith.constant 0 : i32
    %c0_i32_1 = arith.constant 0 : i32
    return %c0_i32, %c0_i32_0 : i32, i32
  }
  func.func @transform_4(%arg0: i32) -> (i32, i32) {
    %c0_i32 = arith.constant 0 : i32
    %c0_i32_0 = arith.constant 0 : i32
    %c0_i32_1 = arith.constant 0 : i32
    return %c0_i32, %c0_i32_0 : i32, i32
  }
  func.func @transform_5(%arg0: i32) -> (i32, i32) {
    %c0_i32 = arith.constant 0 : i32
    %c0_i32_0 = arith.constant 0 : i32
    %c0_i32_1 = arith.constant 0 : i32
    return %c0_i32, %c0_i32_0 : i32, i32
  }
  func.func @transform_6(%arg0: i32) -> (i32, i32) {
    %c0_i32 = arith.constant 0 : i32
    %c0_i32_0 = arith.constant 0 : i32
    %c0_i32_1 = arith.constant 0 : i32
    return %c0_i32, %c0_i32_0 : i32, i32
  }
  func.func @transform_7(%arg0: i32) -> (i32, i32) {
    %c0_i32 = arith.constant 0 : i32
    %c0_i32_0 = arith.constant 0 : i32
    %c0_i32_1 = arith.constant 0 : i32
    return %c0_i32, %c0_i32_0 : i32, i32
  }
  func.func @transform_8(%arg0: i32) -> (i32, i32) {
    %c0_i32 = arith.constant 0 : i32
    %c0_i32_0 = arith.constant 0 : i32
    %c0_i32_1 = arith.constant 0 : i32
    return %c0_i32, %c0_i32_0 : i32, i32
  }
  func.func @transform_9(%arg0: i32) -> (i32, i32) {
    %c0_i32 = arith.constant 0 : i32
    %c0_i32_0 = arith.constant 0 : i32
    %c0_i32_1 = arith.constant 0 : i32
    return %c0_i32, %c0_i32_0 : i32, i32
  }
  func.func @transform_10(%arg0: i32) -> (i32, i32) {
    %c0_i32 = arith.constant 0 : i32
    %c0_i32_0 = arith.constant 0 : i32
    %c0_i32_1 = arith.constant 0 : i32
    return %c0_i32, %c0_i32_0 : i32, i32
  }
  func.func @transform_11(%arg0: i32) -> (i32, i32) {
    %c0_i32 = arith.constant 0 : i32
    %c0_i32_0 = arith.constant 0 : i32
    %c0_i32_1 = arith.constant 0 : i32
    return %c0_i32, %c0_i32_0 : i32, i32
  }
  func.func @transform_12(%arg0: i32) -> (i32, i32) {
    %c0_i32 = arith.constant 0 : i32
    %c0_i32_0 = arith.constant 0 : i32
    %c0_i32_1 = arith.constant 0 : i32
    return %c0_i32, %c0_i32_0 : i32, i32
  }
  func.func @transform_13(%arg0: i32) -> (i32, i32, i32) {
    %c0_i32 = arith.constant 0 : i32
    %c0_i32_0 = arith.constant 0 : i32
    %c0_i32_1 = arith.constant 0 : i32
    return %arg0, %c0_i32, %c0_i32_0 : i32, i32, i32
  }
}

</mosaic_0001>

<bundles_post_ra>
// kernel: tpu_custom_call.1
= control target key start
LH: loop header
LB: loop body
LE: loop exit
PB: predicated region body
PF: predicated region fallthrough
CT: control target
= control target key end

     0   :  { %s5226_s0 = inlined_call_operand.hbm [shape: f32[2,8,32], index: 0, kind: input, shape index: {}]   ;;  %s5227_s1 = inlined_call_operand.vmem [shape: f32[1,32], index: 1, kind: input, shape index: {}]   ;;  %s5228_s2 = inlined_call_operand.vmem [shape: f32[1,32], index: 2, kind: input, shape index: {}]   ;;  %s5229_s3 = inlined_call_operand.hbm [shape: f32[32,96], index: 3, kind: input, shape index: {}]   ;;  %s5230_s4 = inlined_call_operand.hbm [shape: f32[1,96], index: 4, kind: input, shape index: {}]   ;;  %s5231_s5 = inlined_call_operand.hbm [shape: f32[32,32], index: 5, kind: input, shape index: {}]   ;;  %s5232_s6 = inlined_call_operand.hbm [shape: f32[1,32], index: 6, kind: input, shape index: {}]   ;;  %s5233_s7 = inlined_call_operand.hbm [shape: f32[1,32], index: 7, kind: input, shape index: {}]   ;;  %s5234_s8 = inlined_call_operand.hbm [shape: f32[1,32], index: 8, kind: input, shape index: {}]   ;;  %s5235_s9 = inlined_call_operand.vmem [shape: f32[32,32], index: 9, kind: input, shape index: {}]   ;;  %s5236_s10 = inlined_call_operand.vmem [shape: f32[1,32], index: 10, kind: input, shape index: {}]   ;;  %s5237_s11 = inlined_call_operand.hbm [shape: f32[32,32], index: 11, kind: input, shape index: {}]   ;;  %s5238_s12 = inlined_call_operand.vmem [shape: f32[1,32], index: 12, kind: input, shape index: {}]   ;;  %s5239_s13 = inlined_call_operand.hbm [shape: f32[2,8,32], index: 13, kind: output, shape index: {}]  }
   0x1   :  { %5246 = sst [smem:[#allocation23_spill]] %s5228_s2 }
   0x2   :  { %5247 = sst [smem:[#allocation24_spill]] %s5235_s9 }
   0x3   :  { %5248 = sst [smem:[#allocation25_spill]] %s5236_s10 }
   0x4   :  { %5249 = sst [smem:[#allocation26_spill]] %s5238_s12 }
   0x5   :  { %5250 = sst [smem:[#allocation27_spill]] %s5239_s13 }
   0x6   :  { %18 = vsyncpa [#allocation3], 0 }
   0x7   :  { %20 = vsyncpa [#allocation3 + $0x1], 0 }
   0x8   :  { %21 = vsyncpa [#allocation6], 0 }
   0x9   :  { %22 = vsyncpa [#allocation9], 0 }
   0xa   :  { %23 = vsyncpa [#allocation12], 0 }
   0xb   :  { %24 = vsyncpa [#allocation15], 0 }
   0xc   :  { %25 = vsyncpa [#allocation4], 0 }
   0xd   :  { %27 = vsyncpa [#allocation4 + $0x1], 0  ;;  %s4495_s25 = smov 0   ;;  %s4497_s26 = smov 0  }
   0xe   :  { %s4499_s27 = smov 0   ;;  %s4501_s28 = smov 0  }
   0xf LB: > { %s4393_s29 = smov [#allocation5]   ;;  %s4516_s14 = sadd.s32 4294967295, %s4391_s28   ;;  %s4391_s28 = sphi %s4501_s28, %s5280_s28   ;;  %s4387_s27 = sphi %s4499_s27, %s5279_s27   ;;  %s4383_s26 = sphi %s4497_s26, %s5278_s26   ;;  %s4379_s25 = sphi %s4495_s25, %s5277_s25  }
  0x10   : > { %s360_s30 = sshll.u32 %s4393_s29, 4  ;;  %p3609_p0 = scmp.ge.s32.totalorder %s4391_s28, 1  ;;  %s4521_s30 = int_to_ptr.vmem [resolvable:$true] %s360_s30 }
  0x11   : > { %p5243_p1 = scmp.eq.s32.totalorder %s4516_s14, 0  ;;  %p342_p2 = scmp.lt.s32.totalorder %s4391_s28, 3 }
  0x12   : > { %s4394_s16 = smov [#allocation8]   ;;  %s4395_s19 = smov [#allocation11]  }
  0x13   : > { %p4523_p3 = pnand %p3609_p0, %p342_p2  ;;  %s384_s17 = sshll.u32 %s4394_s16, 4  ;;  %s4536_s17 = int_to_ptr.vmem [resolvable:$true] %s384_s17 }
  0x14   : > { %s409_s20 = sshll.u32 %s4395_s19, 4  ;;  %s4083_s23 = scalar_lea.hbm %s5229_s3, 512  ;;  %s4538_s20 = int_to_ptr.vmem [resolvable:$true] %s409_s20 }
  0x15   : > { %s5251_s15 = scalar_select %p4523_p3, 1, 0 }
  0x16   : > { %p3934_p5 = pneg %p4523_p3  ;;  %p4084_p7 = scmp.ne.s32.totalorder %s5229_s3, %s4083_s23 }
  0x17   : > { %p4090_p11 = scmp.lt.u32.totalorder %s4083_s23, %s5229_s3 }
  0x18   : > { %p4532_p6 = pnand %p3934_p5, %p5243_p1 }
  0x1a   : > { %p4548_p8 = pneg %p4532_p6 }
  0x1c   : > { %p4086_p9 = pnand %p4548_p8, %p4084_p7 }
  0x1e   : > { %p4087_p10 = pneg %p4086_p9 }
  0x20   : > { %p4092_p12 = pnand %p4090_p11, %p4087_p10 }
  0x22   : > { %4095 = shalt.err (!%p4092_p12)
}
  0x23   : > { %s4096_s21 = scalar_lea.vmem %s4521_s30, 512  ;;  %p4104_p5 = scmp.lt.s32.totalorder %s4521_s30, %s4521_s30 }
  0x24   : > { %p4097_p13 = scmp.ne.s32.totalorder %s4521_s30, %s4096_s21  ;;  %p4105_p4 = scmp.lt.s32.totalorder %s4096_s21, %s4096_s21 }
  0x26   : > { %p4099_p0 = pnand %p4097_p13, %p4548_p8  ;;  %p4106_p7 = por %p4105_p4, %p4104_p5 }
  0x28   : > { %p4100_p2 = pneg %p4099_p0 }
  0x2a   : > { %p4107_p9 = pnand %p4106_p7, %p4100_p2 }
  0x2c   : > { %4110 = shalt.err (!%p4107_p9)
}
  0x2d   : > { %s5242_s22 = smov 128   ;;  %s4397_s13 = smov 8  }
  0x2e   : > { %3937 = dma.hbm_to_vmem [thread:$0]  (!%p4532_p6), %s5229_s3, 512, %s4521_s30, [#allocation6], %s5242_s22, %s5242_s22, %s4397_s13  }
  0x2f   : > { %s4111_s21 = scalar_lea.hbm %s5231_s5, 512 }
  0x30   : > { %p4112_p4 = scmp.ne.s32.totalorder %s5231_s5, %s4111_s21  ;;  %p4118_p12 = scmp.lt.u32.totalorder %s4111_s21, %s5231_s5 }
  0x32   : > { %p4114_p10 = pnand %p4112_p4, %p4548_p8 }
  0x34   : > { %p4115_p11 = pneg %p4114_p10 }
  0x36   : > { %p4120_p13 = pnand %p4118_p12, %p4115_p11 }
  0x38   : > { %4123 = shalt.err (!%p4120_p13)
}
  0x39   : > { %s4124_s30 = scalar_lea.vmem %s4536_s17, 512  ;;  %p4132_p7 = scmp.lt.s32.totalorder %s4536_s17, %s4536_s17 }
  0x3a   : > { %p4125_p0 = scmp.ne.s32.totalorder %s4536_s17, %s4124_s30  ;;  %p4133_p9 = scmp.lt.s32.totalorder %s4124_s30, %s4124_s30 }
  0x3c   : > { %p4127_p2 = pnand %p4125_p0, %p4548_p8  ;;  %p4134_p4 = por %p4133_p9, %p4132_p7 }
  0x3e   : > { %p4128_p5 = pneg %p4127_p2 }
  0x40   : > { %p4135_p10 = pnand %p4134_p4, %p4128_p5 }
  0x42   : > { %4138 = shalt.err (!%p4135_p10)
}
  0x43   : > { %3943 = dma.hbm_to_vmem [thread:$0]  (!%p4532_p6), %s5231_s5, 512, %s4536_s17, [#allocation9], %s5242_s22, %s5242_s22, %s4397_s13  }
  0x44   : > { %s4139_s23 = scalar_lea.hbm %s5233_s7, 16 }
  0x45   : > { %p4140_p11 = scmp.ne.s32.totalorder %s5233_s7, %s4139_s23  ;;  %p4146_p0 = scmp.lt.u32.totalorder %s4139_s23, %s5233_s7 }
  0x47   : > { %p4142_p12 = pnand %p4140_p11, %p4548_p8 }
  0x49   : > { %p4143_p13 = pneg %p4142_p12 }
  0x4b   : > { %p4148_p2 = pnand %p4146_p0, %p4143_p13 }
  0x4d   : > { %4151 = shalt.err (!%p4148_p2)
}
  0x4e   : > { %s4152_s17 = scalar_lea.vmem %s4538_s20, 16  ;;  %s4159_s30 = scalar_lea.vmem %s4538_s20, 32 }
  0x4f   : > { %p4153_p5 = scmp.ne.s32.totalorder %s4538_s20, %s4152_s17  ;;  %p4160_p4 = scmp.lt.s32.totalorder %s4538_s20, %s4538_s20 }
  0x50   : > { %p4161_p10 = scmp.lt.s32.totalorder %s4159_s30, %s4152_s17 }
  0x51   : > { %p4155_p7 = pnand %p4153_p5, %p4548_p8 }
  0x52   : > { %p4162_p11 = por %p4161_p10, %p4160_p4 }
  0x53   : > { %p4156_p9 = pneg %p4155_p7 }
  0x55   : > { %p4163_p12 = pnand %p4162_p11, %p4156_p9 }
  0x57   : > { %4166 = shalt.err (!%p4163_p12)
}
  0x58   : > { %3949 = dma.hbm_to_vmem [thread:$0]  (!%p4532_p6), %s5233_s7, 16, %s4538_s20, [#allocation12]  }
  0x59   : > { %s4398_s10 = smov [#allocation7]   ;;  %s4399_s23 = smov [#allocation10]  }
  0x5a   : > { %s374_s12 = sshll.u32 %s4398_s10, 4  ;;  %s398_s24 = sshll.u32 %s4399_s23, 4  ;;  %s375_s12 = int_to_ptr.vmem [resolvable:$true] %s374_s12  ;;  %s399_s24 = int_to_ptr.vmem [resolvable:$true] %s398_s24 }
  0x5b   : > { %s4167_s21 = scalar_lea.hbm %s5230_s4, 16 }
  0x5c   : > { %p4168_p13 = scmp.ne.s32.totalorder %s5230_s4, %s4167_s21  ;;  %p4174_p5 = scmp.lt.u32.totalorder %s4167_s21, %s5230_s4 }
  0x5e   : > { %p4170_p0 = pnand %p4168_p13, %p4548_p8 }
  0x60   : > { %p4171_p2 = pneg %p4170_p0 }
  0x62   : > { %p4176_p7 = pnand %p4174_p5, %p4171_p2 }
  0x64   : > { %4179 = shalt.err (!%p4176_p7)
}
  0x65   : > { %s4180_s20 = scalar_lea.vmem %s375_s12, 16  ;;  %s4187_s9 = scalar_lea.vmem %s375_s12, 32 }
  0x66   : > { %p4181_p9 = scmp.ne.s32.totalorder %s375_s12, %s4180_s20  ;;  %p4188_p11 = scmp.lt.s32.totalorder %s375_s12, %s375_s12 }
  0x67   : > { %p4189_p12 = scmp.lt.s32.totalorder %s4187_s9, %s4180_s20 }
  0x68   : > { %p4183_p4 = pnand %p4181_p9, %p4548_p8 }
  0x69   : > { %p4190_p1 = por %p4189_p12, %p4188_p11 }
  0x6a   : > { %p4184_p10 = pneg %p4183_p4 }
  0x6c   : > { %p4191_p3 = pnand %p4190_p1, %p4184_p10 }
  0x6e   : > { %4194 = shalt.err (!%p4191_p3)
}
  0x6f   : > { %3940 = dma.hbm_to_vmem [thread:$0]  (!%p4532_p6), %s5230_s4, 16, %s375_s12, [#allocation6]  }
  0x70   : > { %s4195_s19 = scalar_lea.hbm %s5232_s6, 16 }
  0x71   : > { %p4196_p13 = scmp.ne.s32.totalorder %s5232_s6, %s4195_s19  ;;  %p4202_p3 = scmp.lt.u32.totalorder %s4195_s19, %s5232_s6 }
  0x73   : > { %p4198_p0 = pnand %p4196_p13, %p4548_p8 }
  0x75   : > { %p4199_p1 = pneg %p4198_p0 }
  0x77   : > { %p4204_p2 = pnand %p4202_p3, %p4199_p1 }
  0x79   : > { %4207 = shalt.err (!%p4204_p2)
}
  0x7a   : > { %s4208_s20 = scalar_lea.vmem %s399_s24, 16  ;;  %s4215_s12 = scalar_lea.vmem %s399_s24, 32 }
  0x7b   : > { %p4209_p5 = scmp.ne.s32.totalorder %s399_s24, %s4208_s20  ;;  %p4216_p4 = scmp.lt.s32.totalorder %s399_s24, %s399_s24 }
  0x7c   : > { %p4217_p10 = scmp.lt.s32.totalorder %s4215_s12, %s4208_s20 }
  0x7d   : > { %p4211_p7 = pnand %p4209_p5, %p4548_p8 }
  0x7e   : > { %p4218_p11 = por %p4217_p10, %p4216_p4 }
  0x7f   : > { %p4212_p9 = pneg %p4211_p7 }
  0x81   : > { %p4219_p12 = pnand %p4218_p11, %p4212_p9 }
  0x83   : > { %4222 = shalt.err (!%p4219_p12)
}
  0x84   : > { %3946 = dma.hbm_to_vmem [thread:$0]  (!%p4532_p6), %s5232_s6, 16, %s399_s24, [#allocation9]  }
  0x85   : > { %s4400_s23 = smov [#allocation13]   ;;  %s4401_s29 = smov [#allocation14]  }
  0x86   : > { %s420_s22 = sshll.u32 %s4400_s23, 4  ;;  %s436_s19 = sshll.u32 %s4401_s29, 4  ;;  %s421_s22 = int_to_ptr.vmem [resolvable:$true] %s420_s22  ;;  %s437_s19 = int_to_ptr.vmem [resolvable:$true] %s436_s19 }
  0x87   : > { %s4223_s30 = scalar_lea.hbm %s5234_s8, 16 }
  0x88   : > { %p4224_p13 = scmp.ne.s32.totalorder %s5234_s8, %s4223_s30  ;;  %p4230_p3 = scmp.lt.u32.totalorder %s4223_s30, %s5234_s8 }
  0x8a   : > { %p4226_p0 = pnand %p4224_p13, %p4548_p8 }
  0x8c   : > { %p4227_p1 = pneg %p4226_p0 }
  0x8e   : > { %p4232_p2 = pnand %p4230_p3, %p4227_p1 }
  0x90   : > { %4235 = shalt.err (!%p4232_p2)
}
  0x91   : > { %s4236_s24 = scalar_lea.vmem %s421_s22, 16  ;;  %s4243_s10 = scalar_lea.vmem %s421_s22, 32 }
  0x92   : > { %p4237_p5 = scmp.ne.s32.totalorder %s421_s22, %s4236_s24  ;;  %p4244_p4 = scmp.lt.s32.totalorder %s421_s22, %s421_s22 }
  0x93   : > { %p4245_p10 = scmp.lt.s32.totalorder %s4243_s10, %s4236_s24 }
  0x94   : > { %p4239_p7 = pnand %p4237_p5, %p4548_p8 }
  0x95   : > { %p4246_p11 = por %p4245_p10, %p4244_p4 }
  0x96   : > { %p4240_p9 = pneg %p4239_p7 }
  0x98   : > { %p4247_p12 = pnand %p4246_p11, %p4240_p9 }
  0x9a   : > { %4250 = shalt.err (!%p4247_p12)
}
  0x9b   : > { %3952 = dma.hbm_to_vmem [thread:$0]  (!%p4532_p6), %s5234_s8, 16, %s421_s22, [#allocation12]  }
  0x9c   : > { %s4251_s30 = scalar_lea.hbm %s5237_s11, 512 }
  0x9d   : > { %p4252_p13 = scmp.ne.s32.totalorder %s5237_s11, %s4251_s30  ;;  %p4258_p3 = scmp.lt.u32.totalorder %s4251_s30, %s5237_s11 }
  0x9f   : > { %p4254_p0 = pnand %p4252_p13, %p4548_p8 }
  0xa1   : > { %p4255_p1 = pneg %p4254_p0 }
  0xa3   : > { %p4260_p2 = pnand %p4258_p3, %p4255_p1 }
  0xa5   : > { %4263 = shalt.err (!%p4260_p2)
}
  0xa6   : > { %s4264_s24 = scalar_lea.vmem %s437_s19, 512  ;;  %p4272_p4 = scmp.lt.s32.totalorder %s437_s19, %s437_s19 }
  0xa7   : > { %p4265_p5 = scmp.ne.s32.totalorder %s437_s19, %s4264_s24  ;;  %p4273_p10 = scmp.lt.s32.totalorder %s4264_s24, %s4264_s24 }
  0xa9   : > { %p4267_p7 = pnand %p4265_p5, %p4548_p8  ;;  %p4274_p11 = por %p4273_p10, %p4272_p4 }
  0xab   : > { %p4268_p9 = pneg %p4267_p7 }
  0xad   : > { %p4275_p12 = pnand %p4274_p11, %p4268_p9 }
  0xaf   : > { %4278 = shalt.err (!%p4275_p12)
}
  0xb0   : > { %s5254_s22 = smov 128   ;;  %s3608_s18 = sadd.s32 4294967294, %s4391_s28  }
  0xb1   : > { %3955 = dma.hbm_to_vmem [thread:$0]  (!%p4532_p6), %s5237_s11, 512, %s437_s19, [#allocation15], %s5254_s22, %s5254_s22, %s4397_s13  }
  0xb2   : > { %s4699_s16 = sadd.s32 1, %s4391_s28   ;;  %s40_s29 = sadd.s32 1, %s4387_s27 }
  0xb3   : > { %s37_s21 = ssub.s32 %s4391_s28, %s4699_s16  ;;  %p47_p8 = scmp.ne.s32.totalorder %s4387_s27, %s4383_s26 }
  0xb4   : > { %p38_p13 = scmp.eq.s32.totalorder %s37_s21, 0  ;;  %p48_p0 = scmp.eq.s32.totalorder %s4391_s28, 0 }
  0xb5   : > { %p53_p1 = scmp.ne.s32.totalorder %s4383_s26, %s4379_s25  ;;  %p329_p3 = scmp.eq.s32.totalorder %s4516_s14, 1 }
  0xb6   : > { %s4711_s17 = scalar_select %p38_p13, %s4387_s27, %s40_s29  }
  0xb7   : > { %p49_p2 = por %p48_p0, %p47_p8  ;;  %p5255_p5 = scmp.eq.s32.totalorder %s4516_s14, 0 }
  0xb8   : > { %p4719_p6 = por %p329_p3, %p47_p8  ;;  %p335_p9 = scmp.eq.s32.totalorder %s3608_s18, 1 }
  0xb9   : > { %p4715_p7 = por %p5255_p5, %p53_p1  ;;  %p3971_p4 = scmp.lt.s32.totalorder %s4391_s28, 2 }
  0xba   : > { %s5257_s13 = scalar_select %p4719_p6, 1, 0 }
  0xbb   : > { %s453_s19 = sand.u32 1, %s4387_s27   ;;  %p4725_p10 = por %p335_p9, %p53_p1 }
  0xbc   : > { %s3618_s20 = sshll.u32 %s453_s19, 3  ;;  %s3619_s12 = sshll.u32 %s4391_s28, 7 }
  0xbd   : > { %s5258_s2 = scalar_select %p4725_p10, 1, 0 }
  0xbe   : > { %s4733_s22 = scalar_lea.hbm %s5226_s0, %s3619_s12  ;;  %s457_s10 = scalar_lea.vmem [#allocation2], %s3618_s20 }
  0xbf   : > { %s464_s23 = sshll.u32 %s457_s10, 4  ;;  %p4735_p11 = pnand %p3971_p4, %p49_p2  ;;  %s4739_s23 = int_to_ptr.vmem [resolvable:$true] %s464_s23 }
  0xc0   : > { %s454_s29 = scalar_lea.sflag [#allocation3], %s453_s19  ;;  %s4279_s21 = scalar_lea.hbm %s4733_s22, 128 }
  0xc1   : > { %p4280_p12 = scmp.ne.s32.totalorder %s4733_s22, %s4279_s21  ;;  %p4281_p8 = pneg %p4735_p11 }
  0xc2   : > { %s4284_s9 = scalar_lea.hbm %s5226_s0, 256  ;;  %p4285_p1 = scmp.lt.u32.totalorder %s4733_s22, %s5226_s0 }
  0xc3   : > { %p4282_p13 = pnand %p4281_p8, %p4280_p12  ;;  %p4286_p3 = scmp.lt.u32.totalorder %s4284_s9, %s4279_s21 }
  0xc4   : > { %p4288_p5 = scmp.lt.u32.totalorder %s4279_s21, %s4733_s22 }
  0xc5   : > { %p4283_p0 = pneg %p4282_p13  ;;  %p4287_p2 = por %p4286_p3, %p4285_p1 }
  0xc7   : > { %p4289_p9 = por %p4288_p5, %p4287_p2 }
  0xc9   : > { %p4290_p4 = pnand %p4289_p9, %p4283_p0 }
  0xcb   : > { %4293 = shalt.err (!%p4290_p4)
}
  0xcc   : > { %s4294_s19 = scalar_lea.vmem %s4739_s23, 128  ;;  %s4402_s12 = smov [#allocation2]  }
  0xcd   : > { %p4295_p12 = scmp.ne.s32.totalorder %s4739_s23, %s4294_s19  ;;  %s4299_s20 = sshll.u32 %s4402_s12, 4  ;;  %s4300_s20 = int_to_ptr.vmem [resolvable:$false] %s4299_s20 }
  0xce   : > { %s4301_s24 = scalar_lea.vmem %s4300_s20, 256  ;;  %p4302_p6 = scmp.lt.s32.totalorder %s4739_s23, %s4300_s20 }
  0xcf   : > { %p4297_p13 = pnand %p4295_p12, %p4281_p8  ;;  %p4303_p1 = scmp.lt.s32.totalorder %s4301_s24, %s4294_s19 }
  0xd1   : > { %p4298_p10 = pneg %p4297_p13  ;;  %p4304_p3 = por %p4303_p1, %p4302_p6 }
  0xd3   : > { %p4305_p2 = pnand %p4304_p3, %p4298_p10 }
  0xd5   : > { %4308 = shalt.err (!%p4305_p2)
}
  0xd6   : > { %3959 = dma.hbm_to_vmem [thread:$0]  (!%p4735_p11), %s4733_s22, 128, %s4739_s23, %s454_s29  }
  0xd7   : > { %p5260_p0 = scmp.ne.s32.totalorder %s5251_s15, 0 }
  0xd8   : > { %s4769_s21 = sand.u32 (!%p5260_p0), 1, %s4383_s26  }
  0xd9   : > { %473 = sbr.rel (%p5260_p0) target bundleno = 2964 (0xb94), region = 72  ;;  %s3621_s9 = sshll.u32 (!%p5260_p0), %s4769_s21, 3 }
  0xda   : > { %s476_s10 = scalar_lea.sflag (!%p5260_p0), [#allocation3], %s4769_s21  ;;  %s4775_s19 = scalar_lea.vmem (!%p5260_p0), [#allocation2], %s3621_s9 }
  0xe0   : > { %4354 = dma.done.wait (%p4715_p7), %s476_s10, 128  }
  0xe1   : > { %4356 = vsyncadd (%p4715_p7), %s476_s10, 4294967168  ;;  %p5261_p6 = scmp.eq.s32.totalorder %s4516_s14, 0 }
  0xe3   : > { %4358 = dma.done.wait (%p5261_p6), [#allocation6], 528   ;;  %p5262_p10 = pmov %p5261_p6 }
  0xe4   : > { %p5263_p11 = pmov %p5261_p6 }
  0xe5   : > { %4360 = vsyncadd (%p5262_p10), [#allocation6], 4294966768 }
  0xe6   : > { %4362 = dma.done.wait (%p5263_p11), [#allocation9], 528   ;;  %p5264_p8 = pmov %p5261_p6 }
  0xe7   : > { %p5265_p5 = pmov %p5261_p6 }
  0xe8   : > { %4364 = vsyncadd (%p5264_p8), [#allocation9], 4294966768 }
  0xe9   : > { %4366 = dma.done.wait (%p5265_p5), [#allocation12], 32   ;;  %p5266_p9 = pmov %p5265_p5 }
  0xea   : > { %p5267_p7 = pmov %p5265_p5 }
  0xeb   : > { %4368 = vsyncadd (%p5266_p9), [#allocation12], 4294967264 }
  0xec   : > { %4370 = dma.done.wait (%p5267_p7), [#allocation15], 512   ;;  %p5268_p4 = pmov %p5265_p5 }
  0xed   : > { %vm553_vm0 = vcmask 261120   ;;  %v550_v0 = vld [vmem:[%s4775_s19] sm:$0xff]  ;;  %v582_v7 = vld [vmem:[#allocation5] sm:$0xff]  ;;  %v583_v8 = vld [vmem:[#allocation5 + $0x8] sm:$0xff]  ;;  %v4403_v10 = vmov 0.0|0.0   ;;  %vm4404_vm1 = vmmov 0   ;;  %v693_v37 = vlaneseq }
  0xee   : > { %4372 = vsyncadd (%p5268_p4), [#allocation15], 4294966784  ;;  %v554_v1 = vsel %vm553_vm0, %v550_v0, 0.0  ;;  %v584_v9 = vld [vmem:[#allocation5 + $0x10] sm:$0xff]  ;;  %3878 = vmatprep.subr.bf16.mxu0 %v4403_v10  ;;  %v3879_v11 = vpack.c.bf16 %v583_v8, %v582_v7  ;;  %v585_v12 = vld [vmem:[#allocation5 + $0x18] sm:$0xff]  ;;  %v4405_v13 = vmov 0.0  }
  0xef   : > { %555 = vadd.xlane.f32.xlu0 %v554_v1  ;;  %3762 = vmatprep.mubr.msk.f32.mxu0 %vm4404_vm1, %v4405_v13  ;;  %v3882_v14 = vpack.c.bf16 %v585_v12, %v584_v9  ;;  %v3630_v19 = vld [vmem:[%s5227_s1] ss:$0 sm:$0xff]  ;;  %s5269_s18 = sld [smem:[#allocation23_spill]]  ;;  %v3632_v24 = vld [vmem:[#allocation7] ss:$0 sm:$0xff]  ;;  %s4406_s29 = smov 116  }
  0xf0   : > { %3765 = vmatprep.subr.mxu1 %v4405_v13  ;;  %3767 = vmatprep.mubr.msk.f32.mxu1 %vm4404_vm1, %v4405_v13  ;;  %s4407_s12 = smov 124   ;;  %s4408_s20 = smov 120   ;;  %v4415_v35 = vmov 1983009808   ;;  %v694_v39 = vshrl.u32 %v693_v37, 7  ;;  %vm1552_vm2 = vcmask 31744  }
  0xf1   : > { %3880 = vmatpush3.bf16.msra.mxu0 %v3879_v11  ;;  %s4409_s24 = smov 112   ;;  %s4410_s10 = smov 108   ;;  %v691_v36 = vunpack.c.l.s4 %v4415_v35  ;;  %v4416_v40 = vmov 1934713408   ;;  %vm2161_vm3 = vcmask 64512   ;;  %vm3136_vm4 = vcmask 97280  }
  0xf2   : > { %3881 = vmatprep.subr.bf16.mxu0 %v4403_v10  ;;  %s4411_s15 = smov 104   ;;  %s4412_s30 = smov 100   ;;  %v755_v41 = vunpack.c.l.s4 %v4416_v40  ;;  %vm3138_vm5 = vcmask 130048   ;;  %vm3140_vm6 = vcmask 162816   ;;  %vm3142_vm7 = vcmask 195584  }
  0xf3   : > { %s4413_s22 = smov 96   ;;  %s4414_s23 = smov 64   ;;  %v692_v38 = vunpack.c.0.s8 %v691_v36  ;;  %vm3144_vm8 = vcmask 228352  }
  0xf4   : > { %v756_v47 = vunpack.c.0.s8 %v755_v41  ;;  %p5274_p13 = scmp.ne.s32.totalorder %s5257_s13, 0 }
  0xf5   : > { %3883 = vmatpush3.bf16.msra.mxu0 %v3882_v14  ;;  %v3631_v21 = vld [vmem:[%s5269_s18] ss:$0 sm:$0xff]  ;;  %v4840_v43 = vsub.s32 %v692_v38, %v694_v39  ;;  %s4417_s18 = smov 8  }
  0xf6   : > { %3785 = vmatprep.subr.mxu0 %v4405_v13  ;;  %v4851_v52 = vsub.s32 %v756_v47, %v694_v39 }
 0x17c   : > { %v556_v2 = vpop.xlane.xlu0 %555 }
 0x17d   : > { %v558_v3 = vmul.f32 0.03125, %v556_v2 }
 0x17f   : > { %v559_v4 = vsub.f32 %v550_v0, %v558_v3 }
 0x181   : > { %v560_v5 = vmul.f32 %v559_v4, %v559_v4 }
 0x183   : > { %v561_v6 = vsel %vm553_vm0, %v560_v5, 0.0 }
 0x184   : > { %562 = vadd.xlane.f32.xlu0 %v561_v6 }
 0x211   : > { %v563_v15 = vpop.xlane.xlu0 %562 }
 0x212   : > { %v564_v16 = vmul.f32 0.03125, %v563_v15 }
 0x214   : > { %v565_v17 = vadd.f32 1e-05, %v564_v16 }
 0x216   : > { %4042 = vrsqrt.f32 %v565_v17 }
 0x220   : > { %v4043_v18 = vpop.eup %4042 }
 0x221   : > { %v567_v20 = vmul.f32 %v4043_v18, %v559_v4 }
 0x223   : > { %v574_v22 = vmul.f32 %v3630_v19, %v567_v20 }
 0x225   : > { %v581_v23 = vadd.f32 %v3631_v21, %v574_v22 }
 0x227   : > { %3763 = vmatmul.mubr.msk.f32.vlgmr.msra.gmra.mrb[0].mxu0 %vm553_vm0, %v581_v23 }
 0x228   : > { %3787 = vmatprep.mubr.msk.f32.mxu0 %vm4404_vm1, %v4405_v13 }
 0x2fa   : > { %v662_v25 = vpop.f32.mrb[0].mxu0 }
 0x2fb   : > { %v663_v26 = vadd.f32 %v3632_v24, %v662_v25  ;;  %v3764_v27 = vpop.f32.mrb[1].mxu0 }
 0x2fd   : > { %673 = vrot.lane.b32.xlu0 %v663_v26, %s4406_s29  ;;  %667 = vrot.lane.b32.xlu1 %v663_v26, %s4407_s12  ;;  %s4418_s29 = smov 4   ;;  %s4419_s12 = smov 12  }
 0x301   : > { %670 = vrot.lane.b32.xlu1 %v663_v26, %s4408_s20  ;;  %s4420_s20 = smov 20  }
 0x305   : > { %676 = vrot.lane.b32.xlu1 %v663_v26, %s4409_s24  ;;  %s4421_s24 = smov 16  }
 0x309   : > { %679 = vrot.lane.b32.xlu1 %v663_v26, %s4410_s10  ;;  %s4422_s10 = smov 28  }
 0x30d   : > { %682 = vrot.lane.b32.xlu1 %v663_v26, %s4411_s15  ;;  %s4423_s15 = smov 24  }
 0x311   : > { %685 = vrot.lane.b32.xlu1 %v663_v26, %s4412_s30  ;;  %s5271_s30 = sld [smem:[#allocation25_spill]] }
 0x315   : > { %960 = vrot.lane.b32.xlu1 %v663_v26, %s4413_s22 }
 0x36f   : > { %v4817_v28 = vpop.permute.xlu1 %667  ;;  %v4820_v29 = vpop.permute.xlu0 %673 }
 0x370   : > { %962 = vrot.lane.b32.xlu1 %v4817_v28, %s4413_s22  ;;  %v704_v44 = vcombine.low %v4817_v28, %v4820_v29  ;;  %v705_v46 = vcombine.high %v4817_v28, %v4820_v29 }
 0x372   : > { %v712_v49 = vrot.slane %v704_v44, %v4840_v43  ;;  %v719_v51 = vrot.slane %v705_v46, %v4840_v43 }
 0x373   : > { %v4822_v30 = vpop.permute.xlu1 %670 }
 0x374   : > { %966 = vrot.lane.b32.xlu1 %v4820_v29, %s4413_s22  ;;  %964 = vrot.lane.b32.xlu0 %v4822_v30, %s4413_s22  ;;  %v688_v42 = vcombine.low %v663_v26, %v4822_v30  ;;  %v689_v45 = vcombine.high %v663_v26, %v4822_v30 }
 0x376   : > { %v696_v48 = vrot.slane %v688_v42, %v4840_v43  ;;  %v703_v50 = vrot.slane %v689_v45, %v4840_v43 }
 0x377   : > { %v4826_v31 = vpop.permute.xlu1 %676 }
 0x378   : > { %968 = vrot.lane.b32.xlu0 %v4826_v31, %s4413_s22  ;;  %v752_v53 = vcombine.low %v696_v48, %v712_v49  ;;  %v753_v54 = vcombine.high %v696_v48, %v712_v49  ;;  %v768_v55 = vcombine.low %v703_v50, %v719_v51  ;;  %v769_v56 = vcombine.high %v703_v50, %v719_v51 }
 0x37a   : > { %v760_v58 = vrot.slane %v752_v53, %v4851_v52  ;;  %v767_v59 = vrot.slane %v753_v54, %v4851_v52  ;;  %v776_v60 = vrot.slane %v768_v55, %v4851_v52  ;;  %v783_v61 = vrot.slane %v769_v56, %v4851_v52 }
 0x37b   : > { %v4829_v32 = vpop.permute.xlu1 %679 }
 0x37c   : > { %970 = vrot.lane.b32.xlu1 %v4829_v32, %s4413_s22  ;;  %v3634_v63 = vcombine.low %v760_v58, %v767_v59  ;;  %v3636_v0 = vcombine.high %v760_v58, %v767_v59  ;;  %v3638_v1 = vcombine.low %v776_v60, %v783_v61  ;;  %v3640_v2 = vcombine.high %v776_v60, %v783_v61 }
 0x37e   : > { %v832_v11 = vrot.slane %v3634_v63, %v4840_v43  ;;  %v848_v12 = vrot.slane %v3636_v0, %v4840_v43  ;;  %v864_v20 = vrot.slane %v3638_v1, %v4840_v43  ;;  %v880_v21 = vrot.slane %v3640_v2, %v4840_v43 }
 0x37f   : > { %v4832_v33 = vpop.permute.xlu1 %682 }
 0x380   : > { %972 = vrot.lane.b32.xlu0 %v4832_v33, %s4413_s22  ;;  %v720_v18 = vcombine.low %v4826_v31, %v4832_v33  ;;  %v888_v42 = vcombine.low %v832_v11, %v848_v12  ;;  %v920_v44 = vcombine.low %v864_v20, %v880_v21  ;;  %v889_v61 = vcombine.high %v832_v11, %v848_v12 }
 0x381   : > { %v921_v0 = vcombine.high %v864_v20, %v880_v21 }
 0x382   : > { %v728_v39 = vrot.slane %v720_v18, %v4840_v43  ;;  %v896_v63 = vrot.slane %v888_v42, %v4851_v52  ;;  %v928_v1 = vrot.slane %v920_v44, %v4851_v52 }
 0x383   : > { %v4835_v34 = vpop.permute.xlu1 %685  ;;  %v4897_v18 = vrot.slane %v921_v0, %v4851_v52 }
 0x384   : > { %974 = vrot.lane.b32.xlu1 %v4835_v34, %s4413_s22  ;;  %v736_v9 = vcombine.low %v4829_v32, %v4835_v34  ;;  %v737_v19 = vcombine.high %v4829_v32, %v4835_v34 }
 0x386   : > { %v744_v27 = vrot.slane %v736_v9, %v4840_v43  ;;  %v751_v40 = vrot.slane %v737_v19, %v4840_v43 }
 0x387   : > { %v961_v57 = vpop.permute.xlu1 %960 }
 0x388   : > { %1256 = vrot.lane.b32.xlu1 %v663_v26, %s4414_s23  ;;  %v721_v26 = vcombine.high %v4826_v31, %v4832_v33  ;;  %v784_v50 = vcombine.low %v728_v39, %v744_v27  ;;  %v785_v51 = vcombine.high %v728_v39, %v744_v27 }
 0x38a   : > { %v735_v49 = vrot.slane %v721_v26, %v4840_v43  ;;  %v792_v2 = vrot.slane %v784_v50, %v4851_v52 }
 0x38c   : > { %v801_v58 = vcombine.high %v735_v49, %v751_v40 }
 0x38e   : > { %v815_v9 = vrot.slane %v801_v58, %v4851_v52 }
 0x3e2   : > { %v963_v62 = vpop.permute.xlu1 %962 }
 0x3e6   : > { %v965_v3 = vpop.permute.xlu0 %964  ;;  %v967_v4 = vpop.permute.xlu1 %966 }
 0x3e7   : > { %v984_v5 = vcombine.low %v961_v57, %v965_v3  ;;  %v985_v6 = vcombine.high %v961_v57, %v965_v3  ;;  %v1000_v7 = vcombine.low %v963_v62, %v967_v4  ;;  %v1001_v8 = vcombine.high %v963_v62, %v967_v4 }
 0x3e8   : > { %v800_v57 = vcombine.low %v735_v49, %v751_v40  ;;  %v799_v3 = vrot.slane %v785_v51, %v4851_v52 }
 0x3e9   : > { %v992_v14 = vrot.slane %v984_v5, %v4840_v43  ;;  %v999_v15 = vrot.slane %v985_v6, %v4840_v43  ;;  %v1008_v16 = vrot.slane %v1000_v7, %v4840_v43  ;;  %v1015_v17 = vrot.slane %v1001_v8, %v4840_v43 }
 0x3ea   : > { %v969_v41 = vpop.permute.xlu0 %968  ;;  %v808_v8 = vrot.slane %v800_v57, %v4851_v52  ;;  %v3635_v19 = vcombine.low %v792_v2, %v799_v3  ;;  %v3637_v27 = vcombine.high %v792_v2, %v799_v3 }
 0x3eb   : > { %v1048_v22 = vcombine.low %v992_v14, %v1008_v16  ;;  %v1049_v23 = vcombine.high %v992_v14, %v1008_v16  ;;  %v1064_v24 = vcombine.low %v999_v15, %v1015_v17  ;;  %v1065_v25 = vcombine.high %v999_v15, %v1015_v17 }
 0x3ec   : > { %v4894_v14 = vrot.slane %v889_v61, %v4851_v52  ;;  %v952_v17 = vcombine.low %v896_v63, %v928_v1  ;;  %v839_v42 = vrot.slane %v3635_v19, %v4840_v43  ;;  %v855_v51 = vrot.slane %v3637_v27, %v4840_v43 }
 0x3ed   : > { %v1056_v35 = vrot.slane %v1048_v22, %v4851_v52  ;;  %v1063_v36 = vrot.slane %v1049_v23, %v4851_v52  ;;  %v1072_v37 = vrot.slane %v1064_v24, %v4851_v52  ;;  %v1079_v38 = vrot.slane %v1065_v25, %v4851_v52 }
 0x3ee   : > { %v971_v59 = vpop.permute.xlu1 %970  ;;  %v954_v0 = vcombine.low %v4894_v14, %v4897_v18 }
 0x3ef   : > { %v3642_v45 = vcombine.low %v1056_v35, %v1063_v36  ;;  %v3644_v46 = vcombine.high %v1056_v35, %v1063_v36  ;;  %v3646_v47 = vcombine.low %v1072_v37, %v1079_v38  ;;  %v3648_v48 = vcombine.high %v1072_v37, %v1079_v38 }
 0x3f0   : > { %v3639_v35 = vcombine.low %v808_v8, %v815_v9  ;;  %v3641_v36 = vcombine.high %v808_v8, %v815_v9  ;;  %v953_v37 = vcombine.high %v896_v63, %v928_v1  ;;  %v904_v1 = vcombine.low %v839_v42, %v855_v51 }
 0x3f1   : > { %v1128_v53 = vrot.slane %v3642_v45, %v4840_v43  ;;  %v1144_v54 = vrot.slane %v3644_v46, %v4840_v43  ;;  %v1160_v55 = vrot.slane %v3646_v47, %v4840_v43  ;;  %v1176_v56 = vrot.slane %v3648_v48, %v4840_v43 }
 0x3f2   : > { %v973_v60 = vpop.permute.xlu0 %972  ;;  %v955_v8 = vcombine.high %v4894_v14, %v4897_v18 }
 0x3f3   : > { %v1184_v62 = vcombine.low %v1128_v53, %v1144_v54  ;;  %v1216_v4 = vcombine.low %v1160_v55, %v1176_v56  ;;  %v1016_v5 = vcombine.low %v969_v41, %v973_v60  ;;  %v1017_v6 = vcombine.high %v969_v41, %v973_v60 }
 0x3f4   : > { %v1185_v20 = vcombine.high %v1128_v53, %v1144_v54  ;;  %v1217_v21 = vcombine.high %v1160_v55, %v1176_v56  ;;  %v871_v53 = vrot.slane %v3639_v35, %v4840_v43  ;;  %v887_v54 = vrot.slane %v3641_v36, %v4840_v43 }
 0x3f5   : > { %v1192_v7 = vrot.slane %v1184_v62, %v4851_v52  ;;  %v1224_v12 = vrot.slane %v1216_v4, %v4851_v52  ;;  %v1024_v23 = vrot.slane %v1016_v5, %v4840_v43  ;;  %v1031_v24 = vrot.slane %v1017_v6, %v4840_v43 }
 0x3f6   : > { %v975_v11 = vpop.permute.xlu1 %974  ;;  %v1199_v45 = vrot.slane %v1185_v20, %v4851_v52  ;;  %v1231_v46 = vrot.slane %v1217_v21, %v4851_v52  ;;  %v936_v2 = vcombine.low %v871_v53, %v887_v54 }
 0x3f7   : > { %v1032_v15 = vcombine.low %v971_v59, %v975_v11  ;;  %v1033_v16 = vcombine.high %v971_v59, %v975_v11  ;;  %v1248_v22 = vcombine.low %v1192_v7, %v1224_v12  ;;  %v1249_v44 = vcombine.high %v1192_v7, %v1224_v12 }
 0x3f8   : > { %v1250_v59 = vcombine.low %v1199_v45, %v1231_v46  ;;  %v1251_v7 = vcombine.high %v1199_v45, %v1231_v46  ;;  %v905_v12 = vcombine.high %v839_v42, %v855_v51 }
 0x3f9   : > { %v1040_v25 = vrot.slane %v1032_v15, %v4840_v43  ;;  %v1047_v26 = vrot.slane %v1033_v16, %v4840_v43  ;;  %3766 = vmatpush3.xpose.msk.msra.mxu1 %vm1552_vm2, %v1248_v22  ;;  %v912_v15 = vrot.slane %v904_v1, %v4851_v52  ;;  %v944_v16 = vrot.slane %v936_v2, %v4851_v52 }
 0x3fa   : > { %3770 = vmatprep.subr.mxu1 %v4405_v13  ;;  %v919_v22 = vrot.slane %v905_v12, %v4851_v52 }
 0x3fb   : > { %v1080_v38 = vcombine.low %v1024_v23, %v1040_v25  ;;  %v1081_v39 = vcombine.high %v1024_v23, %v1040_v25  ;;  %v1096_v40 = vcombine.low %v1031_v24, %v1047_v26  ;;  %v1097_v41 = vcombine.high %v1031_v24, %v1047_v26 }
 0x3fc   : > { %3768 = vmatmul.mubr.msk.f32.vlgmr.msra.gmra.mrb[0].mxu1 %vm1552_vm2, %v952_v17  ;;  %v937_v17 = vcombine.high %v871_v53, %v887_v54  ;;  %v956_v21 = vcombine.low %v912_v15, %v944_v16  ;;  %v957_v24 = vcombine.high %v912_v15, %v944_v16 }
 0x3fd   : > { %v1088_v47 = vrot.slane %v1080_v38, %v4851_v52  ;;  %v1095_v48 = vrot.slane %v1081_v39, %v4851_v52  ;;  %v1104_v49 = vrot.slane %v1096_v40, %v4851_v52  ;;  %v1111_v50 = vrot.slane %v1097_v41, %v4851_v52  ;;  %3771 = vmatpush3.xpose.msk.msra.mxu1 %vm1552_vm2, %v1249_v44 }
 0x3fe   : > { %3772 = vmatprep.mubr.msk.f32.mxu1 %vm4404_vm1, %v4405_v13  ;;  %3775 = vmatprep.subr.mxu1 %v4405_v13  ;;  %v951_v23 = vrot.slane %v937_v17, %v4851_v52 }
 0x3ff   : > { %v3643_v55 = vcombine.low %v1088_v47, %v1095_v48  ;;  %v3645_v56 = vcombine.high %v1088_v47, %v1095_v48  ;;  %v3647_v57 = vcombine.low %v1104_v49, %v1111_v50  ;;  %v3649_v58 = vcombine.high %v1104_v49, %v1111_v50 }
 0x400   : > { %3773 = vmatmul.mubr.msk.f32.vlgmr.msra.gmra.mrb[2].mxu1 %vm1552_vm2, %v953_v37  ;;  %v958_v27 = vcombine.low %v919_v22, %v951_v23  ;;  %v959_v35 = vcombine.high %v919_v22, %v951_v23 }
 0x401   : > { %v1135_v60 = vrot.slane %v3643_v55, %v4840_v43  ;;  %v1151_v61 = vrot.slane %v3645_v56, %v4840_v43  ;;  %v1167_v62 = vrot.slane %v3647_v57, %v4840_v43  ;;  %v1183_v63 = vrot.slane %v3649_v58, %v4840_v43  ;;  %3776 = vmatpush3.xpose.msk.msra.mxu1 %vm1552_vm2, %v1250_v59 }
 0x402   : > { %3777 = vmatprep.mubr.msk.f32.mxu1 %vm4404_vm1, %v4405_v13  ;;  %3780 = vmatprep.subr.mxu1 %v4405_v13 }
 0x403   : > { %v1200_v3 = vcombine.low %v1135_v60, %v1151_v61  ;;  %v1201_v4 = vcombine.high %v1135_v60, %v1151_v61  ;;  %v1232_v5 = vcombine.low %v1167_v62, %v1183_v63  ;;  %v1233_v6 = vcombine.high %v1167_v62, %v1183_v63 }
 0x404   : > { %3778 = vmatmul.mubr.msk.f32.vlgmr.msra.gmra.mrb[4].mxu1 %vm1552_vm2, %v954_v0 }
 0x405   : > { %v1208_v9 = vrot.slane %v1200_v3, %v4851_v52  ;;  %v1240_v11 = vrot.slane %v1232_v5, %v4851_v52  ;;  %3781 = vmatpush3.xpose.msk.msra.mxu1 %vm1552_vm2, %v1251_v7  ;;  %3782 = vmatprep.mubr.msk.f32.mxu1 %vm4404_vm1, %v4405_v13  ;;  %v1215_v14 = vrot.slane %v1201_v4, %v4851_v52  ;;  %v1257_v3 = vpop.permute.xlu1 %1256 }
 0x406   : > { %3790 = vmatprep.subr.mxu1 %v4405_v13  ;;  %v1247_v18 = vrot.slane %v1233_v6, %v4851_v52 }
 0x407   : > { %v1252_v19 = vcombine.low %v1208_v9, %v1240_v11  ;;  %v1253_v20 = vcombine.high %v1208_v9, %v1240_v11 }
 0x408   : > { %3783 = vmatmul.mubr.msk.f32.vlgmr.msra.gmra.mrb[6].mxu1 %vm1552_vm2, %v955_v8  ;;  %v1254_v25 = vcombine.low %v1215_v14, %v1247_v18  ;;  %v1255_v26 = vcombine.high %v1215_v14, %v1247_v18 }
 0x409   : > { %3786 = vmatpush3.xpose.msk.msra.mxu0 %vm1552_vm2, %v1252_v19  ;;  %3791 = vmatpush3.xpose.msk.msra.mxu1 %vm1552_vm2, %v1253_v20 }
 0x40a   : > { %3792 = vmatprep.mubr.msk.f32.mxu1 %vm4404_vm1, %v4405_v13  ;;  %3795 = vmatprep.subr.mxu0 %v4405_v13 }
 0x40b   : > { %3800 = vmatprep.subr.mxu1 %v4405_v13 }
 0x40c   : > { %3788 = vmatmul.mubr.msk.f32.vlgmr.msra.gmra.mrb[2].mxu0 %vm1552_vm2, %v956_v21  ;;  %3793 = vmatmul.mubr.msk.f32.vlgmr.msra.gmra.mrb[8].mxu1 %vm1552_vm2, %v957_v24 }
 0x40d   : > { %3796 = vmatpush3.xpose.msk.msra.mxu0 %vm1552_vm2, %v1254_v25  ;;  %3801 = vmatpush3.xpose.msk.msra.mxu1 %vm1552_vm2, %v1255_v26 }
 0x40e   : > { %3797 = vmatprep.mubr.msk.f32.mxu0 %vm4404_vm1, %v4405_v13  ;;  %3802 = vmatprep.mubr.msk.f32.mxu1 %vm4404_vm1, %v4405_v13 }
 0x40f   : > { %3805 = vmatprep.subr.mxu0 %v4405_v13  ;;  %3810 = vmatprep.subr.mxu1 %v4405_v13 }
 0x410   : > { %3798 = vmatmul.mubr.msk.f32.vlgmr.msra.gmra.mrb[4].mxu0 %vm1552_vm2, %v958_v27  ;;  %3803 = vmatmul.mubr.msk.f32.vlgmr.msra.gmra.mrb[10].mxu1 %vm1552_vm2, %v959_v35 }
 0x411   : > { %3807 = vmatprep.mubr.msk.f32.mxu0 %vm4404_vm1, %v4405_v13  ;;  %3812 = vmatprep.mubr.msk.f32.mxu1 %vm4404_vm1, %v4405_v13 }
 0x4cf   : > { %v1625_v36 = vpop.f32.mrb[0].mxu1 }
 0x4d0   : > { %v3769_v37 = vpop.f32.mrb[1].mxu1  ;;  %v2162_v38 = vsel %vm2161_vm3, %v1625_v36, -inf }
 0x4d1   : > { %2163 = vmax.xlane.f32.xlu0 %v2162_v38 }
 0x4d3   : > { %v1701_v39 = vpop.f32.mrb[2].mxu1 }
 0x4d4   : > { %v3774_v40 = vpop.f32.mrb[3].mxu1  ;;  %v2165_v58 = vsel %vm2161_vm3, %v1701_v39, -inf }
 0x4d7   : > { %v1777_v41 = vpop.f32.mrb[4].mxu1 }
 0x4d8   : > { %v3779_v42 = vpop.f32.mrb[5].mxu1  ;;  %v2168_v44 = vsel %vm2161_vm3, %v1777_v41, -inf }
 0x4d9   : > { %2169 = vmax.xlane.f32.xlu0 %v2168_v44 }
 0x4db   : > { %v1853_v45 = vpop.f32.mrb[6].mxu1 }
 0x4dc   : > { %v3784_v46 = vpop.f32.mrb[7].mxu1  ;;  %v2171_v47 = vsel %vm2161_vm3, %v1853_v45, -inf }
 0x4dd   : > { %2172 = vmax.xlane.f32.xlu0 %v2171_v47 }
 0x4df   : > { %v1929_v48 = vpop.f32.mrb[2].mxu0  ;;  %v2005_v49 = vpop.f32.mrb[8].mxu1 }
 0x4e0   : > { %v3789_v50 = vpop.f32.mrb[3].mxu0  ;;  %v2174_v51 = vsel %vm2161_vm3, %v1929_v48, -inf  ;;  %v3794_v53 = vpop.f32.mrb[9].mxu1  ;;  %v2177_v54 = vsel %vm2161_vm3, %v2005_v49, -inf }
 0x4e1   : > { %2175 = vmax.xlane.f32.xlu1 %v2174_v51  ;;  %2178 = vmax.xlane.f32.xlu0 %v2177_v54 }
 0x4e3   : > { %v2081_v55 = vpop.f32.mrb[4].mxu0  ;;  %v2157_v56 = vpop.f32.mrb[10].mxu1 }
 0x4e4   : > { %v3799_v57 = vpop.f32.mrb[5].mxu0  ;;  %v3804_v59 = vpop.f32.mrb[11].mxu1  ;;  %v2183_v60 = vsel %vm2161_vm3, %v2157_v56, -inf  ;;  %v2180_v61 = vsel %vm2161_vm3, %v2081_v55, -inf }
 0x4e5   : > { %2166 = vmax.xlane.f32.xlu1 %v2165_v58  ;;  %2184 = vmax.xlane.f32.xlu0 %v2183_v60 }
 0x4e9   : > { %2181 = vmax.xlane.f32.xlu1 %v2180_v61 }
 0x4fa   : > { %1260 = vrot.lane.b32.xlu1 %v4822_v30, %s4414_s23 }
 0x4fb   : > { %1258 = vrot.lane.b32.xlu0 %v4817_v28, %s4414_s23 }
 0x4fe   : > { %1262 = vrot.lane.b32.xlu1 %v4820_v29, %s4414_s23 }
 0x502   : > { %1264 = vrot.lane.b32.xlu1 %v4826_v31, %s4414_s23 }
 0x55e   : > { %v2164_v62 = vpop.xlane.xlu0 %2163 }
 0x55f   : > { %v2186_v63 = vsub.f32 %v1625_v36, %v2164_v62 }
 0x561   : > { %v2194_v0 = vmul.f32 1.442695, %v2186_v63 }
 0x563   : > { %4044 = vpow2.f32 %v2194_v0 }
 0x566   : > { %v2170_v1 = vpop.xlane.xlu0 %2169 }
 0x567   : > { %v2188_v2 = vsub.f32 %v1777_v41, %v2170_v1 }
 0x569   : > { %v2198_v4 = vmul.f32 1.442695, %v2188_v2 }
 0x56a   : > { %v2173_v5 = vpop.xlane.xlu0 %2172 }
 0x56b   : > { %4046 = vpow2.f32 %v2198_v4  ;;  %v2189_v15 = vsub.f32 %v1853_v45, %v2173_v5 }
 0x56d   : > { %v4985_v30 = vpop.eup %4044  ;;  %v2200_v22 = vmul.f32 1.442695, %v2189_v15 }
 0x56e   : > { %v2176_v6 = vpop.xlane.xlu1 %2175  ;;  %v2179_v28 = vpop.xlane.xlu0 %2178  ;;  %v2210_v29 = vsel %vm2161_vm3, %v4985_v30, 0.0 }
 0x56f   : > { %v2190_v7 = vsub.f32 %v1929_v48, %v2176_v6  ;;  %v2191_v8 = vsub.f32 %v2005_v49, %v2179_v28  ;;  %2211 = vadd.xlane.f32.xlu1 %v2210_v29 }
 0x571   : > { %v2202_v31 = vmul.f32 1.442695, %v2190_v7  ;;  %v2204_v9 = vmul.f32 1.442695, %v2191_v8 }
 0x572   : > { %v2167_v11 = vpop.xlane.xlu1 %2166  ;;  %v2185_v16 = vpop.xlane.xlu0 %2184 }
 0x573   : > { %4048 = vpow2.f32 %v2202_v31  ;;  %v2187_v12 = vsub.f32 %v1701_v39, %v2167_v11  ;;  %v2193_v21 = vsub.f32 %v2157_v56, %v2185_v16 }
 0x574   : > { %4050 = vpow2.f32 %v2204_v9 }
 0x575   : > { %v2196_v17 = vmul.f32 1.442695, %v2187_v12  ;;  %v4989_v19 = vpop.eup %4046  ;;  %v2208_v25 = vmul.f32 1.442695, %v2193_v21 }
 0x576   : > { %v2182_v20 = vpop.xlane.xlu1 %2181  ;;  %v2216_v18 = vsel %vm2161_vm3, %v4989_v19, 0.0  ;;  %v1259_v37 = vpop.permute.xlu0 %1258 }
 0x577   : > { %4052 = vpow2.f32 %v2196_v17  ;;  %v2192_v14 = vsub.f32 %v2081_v55, %v2182_v20  ;;  %2217 = vadd.xlane.f32.xlu1 %v2216_v18 }
 0x579   : > { %v2206_v23 = vmul.f32 1.442695, %v2192_v14 }
 0x57a   : > { %v1261_v24 = vpop.permute.xlu1 %1260 }
 0x57b   : > { %4054 = vpow2.f32 %v2206_v23  ;;  %v1280_v27 = vcombine.low %v1257_v3, %v1261_v24  ;;  %v1281_v35 = vcombine.high %v1257_v3, %v1261_v24 }
 0x57c   : > { %4056 = vpow2.f32 %v2200_v22 }
 0x57d   : > { %v4993_v26 = vpop.eup %4048  ;;  %4058 = vpow2.f32 %v2208_v25  ;;  %v1288_v45 = vrot.slane %v1280_v27, %v4840_v43  ;;  %v1295_v46 = vrot.slane %v1281_v35, %v4840_v43 }
 0x57e   : > { %v4995_v36 = vpop.eup %4050  ;;  %v1263_v38 = vpop.permute.xlu1 %1262  ;;  %v2222_v39 = vsel %vm2161_vm3, %v4993_v26, 0.0 }
 0x57f   : > { %v1296_v40 = vcombine.low %v1259_v37, %v1263_v38  ;;  %v1297_v41 = vcombine.high %v1259_v37, %v1263_v38  ;;  %2223 = vadd.xlane.f32.xlu0 %v2222_v39  ;;  %v2225_v42 = vsel %vm2161_vm3, %v4995_v36, 0.0 }
 0x580   : > { %2226 = vadd.xlane.f32.xlu1 %v2225_v42 }
 0x581   : > { %v5001_v44 = vpop.eup %4052  ;;  %v1304_v47 = vrot.slane %v1296_v40, %v4840_v43  ;;  %v1311_v48 = vrot.slane %v1297_v41, %v4840_v43 }
 0x582   : > { %v2213_v49 = vsel %vm2161_vm3, %v5001_v44, 0.0  ;;  %v1265_v21 = vpop.permute.xlu1 %1264 }
 0x583   : > { %v1344_v50 = vcombine.low %v1288_v45, %v1304_v47  ;;  %v1345_v51 = vcombine.high %v1288_v45, %v1304_v47  ;;  %v1360_v53 = vcombine.low %v1295_v46, %v1311_v48  ;;  %v1361_v54 = vcombine.high %v1295_v46, %v1311_v48  ;;  %2214 = vadd.xlane.f32.xlu0 %v2213_v49 }
 0x585   : > { %v5009_v55 = vpop.eup %4054  ;;  %v1352_v56 = vrot.slane %v1344_v50, %v4851_v52  ;;  %v1359_v57 = vrot.slane %v1345_v51, %v4851_v52  ;;  %v1368_v58 = vrot.slane %v1360_v53, %v4851_v52  ;;  %v1375_v59 = vrot.slane %v1361_v54, %v4851_v52 }
 0x586   : > { %v2228_v60 = vsel %vm2161_vm3, %v5009_v55, 0.0  ;;  %v5017_v61 = vpop.eup %4056 }
 0x587   : > { %v3650_v62 = vcombine.low %v1352_v56, %v1359_v57  ;;  %v3652_v63 = vcombine.high %v1352_v56, %v1359_v57  ;;  %v3654_v0 = vcombine.low %v1368_v58, %v1375_v59  ;;  %v3656_v1 = vcombine.high %v1368_v58, %v1375_v59  ;;  %2229 = vadd.xlane.f32.xlu0 %v2228_v60  ;;  %v5023_v6 = vpop.eup %4058 }
 0x588   : > { %v2219_v28 = vsel %vm2161_vm3, %v5017_v61, 0.0  ;;  %v2231_v16 = vsel %vm2161_vm3, %v5023_v6, 0.0 }
 0x589   : > { %v1424_v2 = vrot.slane %v3650_v62, %v4840_v43  ;;  %v1440_v3 = vrot.slane %v3652_v63, %v4840_v43  ;;  %v1456_v4 = vrot.slane %v3654_v0, %v4840_v43  ;;  %v1472_v5 = vrot.slane %v3656_v1, %v4840_v43 }
 0x58b   : > { %2220 = vadd.xlane.f32.xlu0 %v2219_v28  ;;  %v1480_v7 = vcombine.low %v1424_v2, %v1440_v3  ;;  %v1512_v29 = vcombine.low %v1456_v4, %v1472_v5  ;;  %v1481_v8 = vcombine.high %v1424_v2, %v1440_v3  ;;  %v1513_v31 = vcombine.high %v1456_v4, %v1472_v5 }
 0x58d   : > { %v1488_v9 = vrot.slane %v1480_v7, %v4851_v52  ;;  %v1520_v11 = vrot.slane %v1512_v29, %v4851_v52  ;;  %v1495_v12 = vrot.slane %v1481_v8, %v4851_v52  ;;  %v1527_v15 = vrot.slane %v1513_v31, %v4851_v52 }
 0x58f   : > { %2232 = vadd.xlane.f32.xlu0 %v2231_v16  ;;  %v1544_v17 = vcombine.low %v1488_v9, %v1520_v11  ;;  %v1545_v20 = vcombine.high %v1488_v9, %v1520_v11  ;;  %v1546_v14 = vcombine.low %v1495_v12, %v1527_v15  ;;  %v1547_v18 = vcombine.high %v1495_v12, %v1527_v15 }
 0x591   : > { %1268 = vrot.lane.b32.xlu1 %v4832_v33, %s4414_s23  ;;  %3806 = vmatpush3.msra.mxu0 %v1544_v17 }
 0x592   : > { %3811 = vmatpush3.msra.mxu1 %v1545_v20  ;;  %3815 = vmatprep.subr.mxu0 %v4405_v13 }
 0x593   : > { %3820 = vmatprep.subr.mxu1 %v4405_v13 }
 0x595   : > { %1270 = vrot.lane.b32.xlu1 %v4835_v34, %s4414_s23 }
 0x5a5   : > { %1266 = vrot.lane.b32.xlu0 %v4829_v32, %s4414_s23  ;;  %s5270_s23 = sld [smem:[#allocation24_spill]] }
 0x5fc   : > { %v2212_v22 = vpop.xlane.xlu1 %2211 }
 0x5fd   : > { %4060 = vrcp.f32 %v2212_v22 }
 0x604   : > { %v2218_v23 = vpop.xlane.xlu1 %2217 }
 0x605   : > { %4062 = vrcp.f32 %v2218_v23 }
 0x607   : > { %v4061_v24 = vpop.eup %4060 }
 0x608   : > { %v2242_v33 = vmul.f32 %v4061_v24, %v4985_v30 }
 0x60a   : > { %3808 = vmatmul.mubr.msk.f32.vlgmr.msra.gmra.mrb[6].mxu0 %vm2161_vm3, %v2242_v33 }
 0x60b   : > { %3816 = vmatpush3.msra.mxu0 %v1546_v14  ;;  %3817 = vmatprep.mubr.msk.f32.mxu0 %vm4404_vm1, %v4405_v13 }
 0x60c   : > { %v2224_v25 = vpop.xlane.xlu0 %2223  ;;  %3825 = vmatprep.subr.mxu0 %v4405_v13 }
 0x60d   : > { %v2227_v35 = vpop.xlane.xlu1 %2226 }
 0x60f   : > { %v4063_v34 = vpop.eup %4062 }
 0x610   : > { %v2215_v27 = vpop.xlane.xlu0 %2214  ;;  %v2244_v32 = vmul.f32 %v4063_v34, %v4989_v19 }
 0x611   : > { %4064 = vrcp.f32 %v2215_v27  ;;  %v1269_v38 = vpop.permute.xlu1 %1268 }
 0x612   : > { %3818 = vmatmul.mubr.msk.f32.vlgmr.msra.gmra.mrb[8].mxu0 %vm2161_vm3, %v2244_v32  ;;  %v1312_v42 = vcombine.low %v1265_v21, %v1269_v38  ;;  %v1313_v45 = vcombine.high %v1265_v21, %v1269_v38 }
 0x613   : > { %3827 = vmatprep.mubr.msk.f32.mxu0 %vm4404_vm1, %v4405_v13 }
 0x614   : > { %v2230_v37 = vpop.xlane.xlu0 %2229  ;;  %v1320_v50 = vrot.slane %v1312_v42, %v4840_v43 }
 0x615   : > { %v1271_v19 = vpop.permute.xlu1 %1270 }
 0x618   : > { %v2221_v30 = vpop.xlane.xlu0 %2220 }
 0x619   : > { %4066 = vrcp.f32 %v2221_v30 }
 0x61a   : > { %4068 = vrcp.f32 %v2224_v25 }
 0x61b   : > { %v4065_v39 = vpop.eup %4064  ;;  %4070 = vrcp.f32 %v2227_v35 }
 0x61c   : > { %v2243_v40 = vmul.f32 %v4065_v39, %v5001_v44  ;;  %v2233_v41 = vpop.xlane.xlu0 %2232  ;;  %v1327_v44 = vrot.slane %v1313_v45, %v4840_v43  ;;  %4072 = vrcp.f32 %v2230_v37 }
 0x61d   : > { %4074 = vrcp.f32 %v2233_v41 }
 0x61e   : > { %3813 = vmatmul.mubr.msk.f32.vlgmr.msra.gmra.mrb[12].mxu1 %vm2161_vm3, %v2243_v40 }
 0x61f   : > { %3821 = vmatpush3.msra.mxu1 %v1547_v18  ;;  %3822 = vmatprep.mubr.msk.f32.mxu1 %vm4404_vm1, %v4405_v13 }
 0x620   : > { %v1267_v46 = vpop.permute.xlu0 %1266  ;;  %3830 = vmatprep.subr.mxu1 %v4405_v13 }
 0x621   : > { %v1328_v47 = vcombine.low %v1267_v46, %v1271_v19  ;;  %v1329_v48 = vcombine.high %v1267_v46, %v1271_v19 }
 0x623   : > { %v4067_v49 = vpop.eup %4066  ;;  %v1336_v51 = vrot.slane %v1328_v47, %v4840_v43  ;;  %v1343_v53 = vrot.slane %v1329_v48, %v4840_v43 }
 0x624   : > { %v2245_v54 = vmul.f32 %v4067_v49, %v5017_v61  ;;  %v4069_v29 = vpop.eup %4068 }
 0x625   : > { %v1376_v56 = vcombine.low %v1320_v50, %v1336_v51  ;;  %v1377_v57 = vcombine.high %v1320_v50, %v1336_v51  ;;  %v1392_v58 = vcombine.low %v1327_v44, %v1343_v53  ;;  %v1393_v59 = vcombine.high %v1327_v44, %v1343_v53  ;;  %v4071_v12 = vpop.eup %4070 }
 0x626   : > { %3823 = vmatmul.mubr.msk.f32.vlgmr.msra.gmra.mrb[14].mxu1 %vm2161_vm3, %v2245_v54  ;;  %v4073_v17 = vpop.eup %4072  ;;  %v2246_v23 = vmul.f32 %v4069_v29, %v4993_v26  ;;  %v2247_v24 = vmul.f32 %v4071_v12, %v4995_v36 }
 0x627   : > { %v1384_v60 = vrot.slane %v1376_v56, %v4851_v52  ;;  %v1391_v62 = vrot.slane %v1377_v57, %v4851_v52  ;;  %v1400_v63 = vrot.slane %v1392_v58, %v4851_v52  ;;  %v1407_v0 = vrot.slane %v1393_v59, %v4851_v52  ;;  %3832 = vmatprep.mubr.msk.f32.mxu1 %vm4404_vm1, %v4405_v13  ;;  %v4075_v22 = vpop.eup %4074 }
 0x628   : > { %v2248_v34 = vmul.f32 %v4073_v17, %v5009_v55  ;;  %v2249_v27 = vmul.f32 %v4075_v22, %v5023_v6 }
 0x629   : > { %v3651_v61 = vcombine.low %v1384_v60, %v1391_v62  ;;  %v3653_v1 = vcombine.high %v1384_v60, %v1391_v62  ;;  %v3655_v2 = vcombine.low %v1400_v63, %v1407_v0  ;;  %v3657_v3 = vcombine.high %v1400_v63, %v1407_v0 }
 0x62b   : > { %v1431_v4 = vrot.slane %v3651_v61, %v4840_v43  ;;  %v1447_v5 = vrot.slane %v3653_v1, %v4840_v43  ;;  %v1463_v28 = vrot.slane %v3655_v2, %v4840_v43  ;;  %v1479_v7 = vrot.slane %v3657_v3, %v4840_v43  ;;  %v3146_v61 = vld [vmem:[#allocation8] sm:$0xff]  ;;  %v3147_v1 = vld [vmem:[#allocation8 + $0x8] sm:$0xff] }
 0x62c   : > { %v3885_v2 = vpack.c.bf16 %v3147_v1, %v3146_v61 }
 0x62d   : > { %v1496_v8 = vcombine.low %v1431_v4, %v1447_v5  ;;  %v1528_v31 = vcombine.low %v1463_v28, %v1479_v7  ;;  %v1497_v9 = vcombine.high %v1431_v4, %v1447_v5  ;;  %v1529_v11 = vcombine.high %v1463_v28, %v1479_v7 }
 0x62f   : > { %v1504_v15 = vrot.slane %v1496_v8, %v4851_v52  ;;  %v1536_v16 = vrot.slane %v1528_v31, %v4851_v52  ;;  %v1511_v20 = vrot.slane %v1497_v9, %v4851_v52  ;;  %v1543_v14 = vrot.slane %v1529_v11, %v4851_v52 }
 0x631   : > { %v1548_v18 = vcombine.low %v1504_v15, %v1536_v16  ;;  %v1549_v21 = vcombine.high %v1504_v15, %v1536_v16  ;;  %v1550_v33 = vcombine.low %v1511_v20, %v1543_v14  ;;  %v1551_v25 = vcombine.high %v1511_v20, %v1543_v14 }
 0x633   : > { %3826 = vmatpush3.msra.mxu0 %v1548_v18  ;;  %3831 = vmatpush3.msra.mxu1 %v1549_v21 }
 0x634   : > { %3828 = vmatmul.mubr.msk.f32.vlgmr.msra.gmra.mrb[10].mxu0 %vm2161_vm3, %v2246_v23  ;;  %3833 = vmatmul.mubr.msk.f32.vlgmr.msra.gmra.mrb[16].mxu1 %vm2161_vm3, %v2247_v24 }
 0x635   : > { %3835 = vmatprep.subr.mxu0 %v4405_v13  ;;  %3840 = vmatprep.subr.mxu1 %v4405_v13 }
 0x636   : > { %3836 = vmatpush3.msra.mxu0 %v1550_v33  ;;  %3841 = vmatpush3.msra.mxu1 %v1551_v25 }
 0x637   : > { %3837 = vmatprep.mubr.msk.f32.mxu0 %vm4404_vm1, %v4405_v13  ;;  %3842 = vmatprep.mubr.msk.f32.mxu1 %vm4404_vm1, %v4405_v13 }
 0x638   : > { %3838 = vmatmul.mubr.msk.f32.vlgmr.msra.gmra.mrb[12].mxu0 %vm2161_vm3, %v2248_v34  ;;  %3843 = vmatmul.mubr.msk.f32.vlgmr.msra.gmra.mrb[18].mxu1 %vm2161_vm3, %v2249_v27 }
 0x639   : > { %3884 = vmatprep.subr.bf16.mxu0 %v4403_v10  ;;  %3853 = vmatprep.mubr.msk.f32.mxu0 %vm4404_vm1, %v4405_v13 }
 0x63a   : > { %3890 = vmatprep.subr.bf16.mxu1 %v4403_v10  ;;  %3864 = vmatprep.mubr.msk.f32.mxu1 %vm4404_vm1, %v4405_v13 }
 0x63b   : > { %3886 = vmatpush3.bf16.msra.mxu0 %v3885_v2 }
 0x63c   : > { %3887 = vmatprep.subr.bf16.mxu0 %v4403_v10 }
 0x6dd   : > { %v2319_v26 = vpop.f32.mrb[6].mxu0 }
 0x6de   : > { %v3809_v36 = vpop.f32.mrb[7].mxu0 }
 0x6e5   : > { %v2465_v55 = vpop.f32.mrb[8].mxu0 }
 0x6e6   : > { %v2834_v6 = vcombine.low %v2319_v26, %v2465_v55  ;;  %v2835_v32 = vcombine.high %v2319_v26, %v2465_v55  ;;  %v3819_v35 = vpop.f32.mrb[9].mxu0 }
 0x6e8   : > { %v2842_v42 = vrot.slane %v2834_v6, %v4840_v43  ;;  %v2849_v45 = vrot.slane %v2835_v32, %v4840_v43 }
 0x6f1   : > { %v2392_v37 = vpop.f32.mrb[12].mxu1 }
 0x6f2   : > { %v3814_v30 = vpop.f32.mrb[13].mxu1 }
 0x6f3   : > { %v3148_v30 = vld [vmem:[#allocation8 + $0x10] sm:$0xff] }
 0x6f9   : > { %v2538_v38 = vpop.f32.mrb[14].mxu1 }
 0x6fa   : > { %v2850_v39 = vcombine.low %v2392_v37, %v2538_v38  ;;  %v2851_v40 = vcombine.high %v2392_v37, %v2538_v38  ;;  %v3824_v41 = vpop.f32.mrb[15].mxu1  ;;  %v3149_v38 = vld [vmem:[#allocation8 + $0x18] sm:$0xff] }
 0x6fc   : > { %v2858_v19 = vrot.slane %v2850_v39, %v4840_v43  ;;  %v2865_v46 = vrot.slane %v2851_v40, %v4840_v43 }
 0x6fe   : > { %v2898_v47 = vcombine.low %v2842_v42, %v2858_v19  ;;  %v2899_v48 = vcombine.high %v2842_v42, %v2858_v19  ;;  %v2914_v49 = vcombine.low %v2849_v45, %v2865_v46  ;;  %v2915_v50 = vcombine.high %v2849_v45, %v2865_v46 }
 0x6ff   : > { %v3888_v45 = vpack.c.bf16 %v3149_v38, %v3148_v30  ;;  %v3692_v30 = vld [vmem:[#allocation11] ss:$0 sm:$0xff] }
 0x700   : > { %v2906_v44 = vrot.slane %v2898_v47, %v4851_v52  ;;  %v2913_v51 = vrot.slane %v2899_v48, %v4851_v52  ;;  %v2922_v53 = vrot.slane %v2914_v49, %v4851_v52  ;;  %v2929_v54 = vrot.slane %v2915_v50, %v4851_v52 }
 0x701   : > { %3889 = vmatpush3.bf16.msra.mxu0 %v3888_v45  ;;  %v3372_v45 = vld [vmem:[#allocation14 + $0x8] sm:$0xff] }
 0x702   : > { %v3682_v56 = vcombine.low %v2906_v44, %v2913_v51  ;;  %v3684_v57 = vcombine.high %v2906_v44, %v2913_v51  ;;  %v3686_v58 = vcombine.low %v2922_v53, %v2929_v54  ;;  %v3688_v59 = vcombine.high %v2922_v53, %v2929_v54  ;;  %3896 = vmatprep.subr.bf16.mxu0 %v4403_v10 }
 0x704   : > { %v2978_v60 = vrot.slane %v3682_v56, %v4840_v43  ;;  %v2994_v62 = vrot.slane %v3684_v57, %v4840_v43  ;;  %v3010_v63 = vrot.slane %v3686_v58, %v4840_v43  ;;  %v3026_v0 = vrot.slane %v3688_v59, %v4840_v43 }
 0x706   : > { %v3035_v3 = vcombine.high %v2978_v60, %v2994_v62  ;;  %v3067_v4 = vcombine.high %v3010_v63, %v3026_v0  ;;  %v3034_v5 = vcombine.low %v2978_v60, %v2994_v62  ;;  %v3066_v28 = vcombine.low %v3010_v63, %v3026_v0 }
 0x707   : > { %v2611_v7 = vpop.f32.mrb[10].mxu0  ;;  %v2684_v29 = vpop.f32.mrb[16].mxu1 }
 0x708   : > { %v3829_v8 = vpop.f32.mrb[11].mxu0  ;;  %v3834_v31 = vpop.f32.mrb[17].mxu1  ;;  %v3049_v9 = vrot.slane %v3035_v3, %v4851_v52  ;;  %v3081_v11 = vrot.slane %v3067_v4, %v4851_v52  ;;  %v5110_v12 = vrot.slane %v3034_v5, %v4851_v52  ;;  %v5113_v15 = vrot.slane %v3066_v28, %v4851_v52 }
 0x70a   : > { %v3100_v16 = vcombine.low %v3049_v9, %v3081_v11  ;;  %v3099_v17 = vcombine.high %v5110_v12, %v5113_v15  ;;  %v3101_v20 = vcombine.high %v3049_v9, %v3081_v11  ;;  %v3098_v14 = vcombine.low %v5110_v12, %v5113_v15  ;;  %v3690_v15 = vld [vmem:[#allocation10] ss:$0 sm:$0xff] }
 0x70b   : > { %v2757_v18 = vpop.f32.mrb[12].mxu0  ;;  %v2830_v21 = vpop.f32.mrb[18].mxu1 }
 0x70c   : > { %v2866_v22 = vcombine.low %v2611_v7, %v2757_v18  ;;  %v2867_v23 = vcombine.high %v2611_v7, %v2757_v18  ;;  %v2882_v24 = vcombine.low %v2684_v29, %v2830_v21  ;;  %v2883_v33 = vcombine.high %v2684_v29, %v2830_v21  ;;  %v3844_v25 = vpop.f32.mrb[19].mxu1  ;;  %3111 = vrot.lane.b32.xlu1 %v3100_v16, %s4417_s18  ;;  %v3839_v34 = vpop.f32.mrb[13].mxu0 }
 0x70d   : > { %3107 = vrot.lane.b32.xlu0 %v3099_v17, %s4418_s29  ;;  %v3261_v34 = vld [vmem:[%s5270_s23 + $0x8] sm:$0xff]  ;;  %s3699_s29 = sshll.u32 %s4516_s14, 7  ;;  %s3458_s14 = scalar_lea.sflag [#allocation4], %s4769_s21 }
 0x70e   : > { %v2874_v27 = vrot.slane %v2866_v22, %v4840_v43  ;;  %v2881_v26 = vrot.slane %v2867_v23, %v4840_v43  ;;  %v2890_v36 = vrot.slane %v2882_v24, %v4840_v43  ;;  %v2897_v55 = vrot.slane %v2883_v33, %v4840_v43 }
 0x710   : > { %v2930_v6 = vcombine.low %v2874_v27, %v2890_v36  ;;  %v2931_v32 = vcombine.high %v2874_v27, %v2890_v36  ;;  %v2946_v35 = vcombine.low %v2881_v26, %v2897_v55  ;;  %v2947_v37 = vcombine.high %v2881_v26, %v2897_v55  ;;  %v3262_v26 = vld [vmem:[%s5270_s23 + $0x10] sm:$0xff]  ;;  %v3263_v36 = vld [vmem:[%s5270_s23 + $0x18] sm:$0xff] }
 0x711   : > { %3115 = vrot.lane.b32.xlu0 %v3101_v20, %s4419_s12  ;;  %v3894_v55 = vpack.c.bf16 %v3263_v36, %v3262_v26  ;;  %s549_s12 = scalar_lea.vmem [#allocation16], %s3621_s9  ;;  %s4424_s9 = smov [#allocation16]  }
 0x712   : > { %v2938_v39 = vrot.slane %v2930_v6, %v4851_v52  ;;  %v2945_v40 = vrot.slane %v2931_v32, %v4851_v52  ;;  %v2954_v41 = vrot.slane %v2946_v35, %v4851_v52  ;;  %v2961_v42 = vrot.slane %v2947_v37, %v4851_v52  ;;  %s4313_s18 = sshll.u32 %s4424_s9, 4  ;;  %s4314_s18 = int_to_ptr.vmem [resolvable:$false] %s4313_s18 }
 0x714   : > { %v3683_v19 = vcombine.low %v2938_v39, %v2945_v40  ;;  %v3685_v46 = vcombine.high %v2938_v39, %v2945_v40  ;;  %v3687_v47 = vcombine.low %v2954_v41, %v2961_v42  ;;  %v3689_v48 = vcombine.high %v2954_v41, %v2961_v42  ;;  %v3693_v39 = vld [vmem:[#allocation13] ss:$0 sm:$0xff]  ;;  %v3371_v42 = vld [vmem:[#allocation14] sm:$0xff] }
 0x716   : > { %v2985_v49 = vrot.slane %v3683_v19, %v4840_v43  ;;  %v3001_v50 = vrot.slane %v3685_v46, %v4840_v43  ;;  %v3017_v44 = vrot.slane %v3687_v47, %v4840_v43  ;;  %v3033_v51 = vrot.slane %v3689_v48, %v4840_v43  ;;  %v3373_v46 = vld [vmem:[#allocation14 + $0x10] sm:$0xff]  ;;  %v3374_v47 = vld [vmem:[#allocation14 + $0x18] sm:$0xff] }
 0x717   : > { %v3897_v19 = vpack.c.bf16 %v3372_v45, %v3371_v42  ;;  %v3900_v48 = vpack.c.bf16 %v3374_v47, %v3373_v46 }
 0x718   : > { %v3050_v53 = vcombine.low %v2985_v49, %v3001_v50  ;;  %v3082_v54 = vcombine.low %v3017_v44, %v3033_v51  ;;  %v3051_v56 = vcombine.high %v2985_v49, %v3001_v50  ;;  %v3083_v57 = vcombine.high %v3017_v44, %v3033_v51  ;;  %v3694_v49 = vld [vmem:[%s5271_s30] ss:$0 sm:$0xff] }
 0x71a   : > { %v3058_v58 = vrot.slane %v3050_v53, %v4851_v52  ;;  %v3090_v59 = vrot.slane %v3082_v54, %v4851_v52  ;;  %v3065_v60 = vrot.slane %v3051_v56, %v4851_v52  ;;  %v3097_v62 = vrot.slane %v3083_v57, %v4851_v52 }
 0x71c   : > { %v3103_v63 = vcombine.high %v3058_v58, %v3090_v59  ;;  %v3102_v0 = vcombine.low %v3058_v58, %v3090_v59  ;;  %v3105_v61 = vcombine.high %v3065_v60, %v3097_v62  ;;  %v3104_v1 = vcombine.low %v3065_v60, %v3097_v62 }
 0x71e   : > { %3123 = vrot.lane.b32.xlu0 %v3103_v63, %s4420_s20  ;;  %3119 = vrot.lane.b32.xlu1 %v3102_v0, %s4421_s24  ;;  %s3471_s20 = sshll.u32 %s549_s12, 4  ;;  %s5183_s20 = int_to_ptr.vmem [resolvable:$true] %s3471_s20 }
 0x71f   : > { %s4309_s22 = scalar_lea.vmem %s5183_s20, 128  ;;  %p4316_p2 = scmp.lt.s32.totalorder %s5183_s20, %s4314_s18 }
 0x720   : > { %p4310_p12 = scmp.ne.s32.totalorder %s5183_s20, %s4309_s22 }
 0x722   : > { %3131 = vrot.lane.b32.xlu0 %v3105_v61, %s4422_s10  ;;  %3127 = vrot.lane.b32.xlu1 %v3104_v1, %s4423_s15  ;;  %s5273_s15 = sld [smem:[#allocation27_spill]]  ;;  %p4311_p1 = pnand %p4310_p12, %p5274_p13 }
 0x724   : > { %p4312_p3 = pneg %p4311_p1 }
 0x728   : > { %s5181_s30 = scalar_lea.hbm %s5273_s15, %s3699_s29 }
 0x77e   : > { %v3112_v2 = vpop.permute.xlu1 %3111 }
 0x77f   : > { %v3108_v43 = vpop.permute.xlu0 %3107 }
 0x780   : > { %v3134_v3 = vsel %vm1552_vm2, %v3098_v14, %v3108_v43  ;;  %v4082_v14 = vld [vmem:[%s4775_s19] sm:$0xff]  ;;  %s5272_s19 = sld [smem:[#allocation26_spill]] }
 0x781   : > { %v3135_v4 = vsel %vm2161_vm3, %v3134_v3, %v3112_v2 }
 0x783   : > { %v3116_v52 = vpop.permute.xlu0 %3115 }
 0x784   : > { %v3137_v5 = vsel %vm3136_vm4, %v3135_v4, %v3116_v52 }
 0x790   : > { %v3124_v28 = vpop.permute.xlu0 %3123  ;;  %v3120_v7 = vpop.permute.xlu1 %3119 }
 0x791   : > { %v3139_v29 = vsel %vm3138_vm5, %v3137_v5, %v3120_v7 }
 0x792   : > { %v3141_v31 = vsel %vm3140_vm6, %v3139_v29, %v3124_v28 }
 0x794   : > { %v3132_v8 = vpop.permute.xlu0 %3131  ;;  %v3128_v9 = vpop.permute.xlu1 %3127 }
 0x795   : > { %v3143_v11 = vsel %vm3142_vm7, %v3141_v31, %v3128_v9 }
 0x796   : > { %v3145_v12 = vsel %vm3144_vm8, %v3143_v11, %v3132_v8  ;;  %v3696_v11 = vld [vmem:[%s5272_s19] ss:$0 sm:$0xff]  ;;  %s4315_s19 = scalar_lea.vmem %s4314_s18, 256 }
 0x797   : > { %3854 = vmatmul.mubr.msk.f32.vlgmr.msra.gmra.mrb[14].mxu0 %vm553_vm0, %v3145_v12  ;;  %p4317_p0 = scmp.lt.s32.totalorder %s4315_s19, %s4309_s22 }
 0x798   : > { %3875 = vmatprep.mubr.msk.f32.mxu0 %vm4404_vm1, %v4405_v13  ;;  %v3260_v13 = vld [vmem:[%s5270_s23] sm:$0xff]  ;;  %3898 = vmatpush3.bf16.msra.mxu0 %v3897_v19 }
 0x799   : > { %v3891_v27 = vpack.c.bf16 %v3261_v34, %v3260_v13  ;;  %3899 = vmatprep.subr.bf16.mxu0 %v4403_v10  ;;  %p4318_p6 = por %p4317_p0, %p4316_p2 }
 0x79b   : > { %3892 = vmatpush3.bf16.msra.mxu1 %v3891_v27  ;;  %p4319_p10 = pnand %p4318_p6, %p4312_p3 }
 0x79c   : > { %3893 = vmatprep.subr.bf16.mxu1 %v4403_v10  ;;  %3901 = vmatpush3.bf16.msra.mxu0 %v3900_v48 }
 0x79f   : > { %3895 = vmatpush3.bf16.msra.mxu1 %v3894_v55 }
 0x86a   : > { %v3226_v16 = vpop.f32.mrb[14].mxu0 }
 0x86b   : > { %v3227_v17 = vadd.f32 %v3690_v15, %v3226_v16  ;;  %v3855_v20 = vpop.f32.mrb[15].mxu0 }
 0x86d   : > { %v5146_v18 = vadd.f32 %v4082_v14, %v3227_v17 }
 0x86f   : > { %v3233_v21 = vsel %vm553_vm0, %v5146_v18, 0.0 }
 0x870   : > { %3234 = vadd.xlane.f32.xlu1 %v3233_v21 }
 0x8fd   : > { %v3235_v22 = vpop.xlane.xlu1 %3234 }
 0x8fe   : > { %v3236_v23 = vmul.f32 0.03125, %v3235_v22 }
 0x900   : > { %v3237_v24 = vsub.f32 %v5146_v18, %v3236_v23 }
 0x902   : > { %v3238_v33 = vmul.f32 %v3237_v24, %v3237_v24 }
 0x904   : > { %v3239_v25 = vsel %vm553_vm0, %v3238_v33, 0.0 }
 0x905   : > { %3240 = vadd.xlane.f32.xlu0 %v3239_v25 }
 0x992   : > { %v3241_v6 = vpop.xlane.xlu0 %3240 }
 0x993   : > { %v3242_v32 = vmul.f32 0.03125, %v3241_v6 }
 0x995   : > { %v3243_v35 = vadd.f32 1e-05, %v3242_v32 }
 0x997   : > { %4076 = vrsqrt.f32 %v3243_v35 }
 0x9a1   : > { %v4077_v37 = vpop.eup %4076 }
 0x9a2   : > { %v3245_v38 = vmul.f32 %v4077_v37, %v3237_v24 }
 0x9a4   : > { %v3252_v40 = vmul.f32 %v3692_v30, %v3245_v38 }
 0x9a6   : > { %v3259_v41 = vadd.f32 %v3693_v39, %v3252_v40 }
 0x9a8   : > { %3865 = vmatmul.mubr.msk.f32.vlgmr.msra.gmra.mrb[20].mxu1 %vm553_vm0, %v3259_v41 }
 0xa7b   : > { %v3340_v50 = vpop.f32.mrb[20].mxu1 }
 0xa7c   : > { %v3341_v44 = vadd.f32 %v3694_v49, %v3340_v50  ;;  %v3866_v51 = vpop.f32.mrb[21].mxu1 }
 0xa7e   : > { %v3345_v53 = vmul.f32 0.70710677, %v3341_v44  ;;  %v3344_v8 = vmul.f32 0.5, %v3341_v44 }
 0xa80   : > { %v3346_v54 = vand.u32 2147483647, %v3345_v53  ;;  %vm3366_vm9 = vcmp.lt.f32.partialorder %v3345_v53, 0.0 }
 0xa82   : > { %v3347_v56 = vmul.f32 0.3275911, %v3346_v54  ;;  %v3360_v58 = vsub.f32 0.0, %v3346_v54 }
 0xa84   : > { %v3348_v57 = vadd.f32 1.0, %v3347_v56  ;;  %v3361_v60 = vmul.f32 %v3360_v58, %v3346_v54 }
 0xa86   : > { %4078 = vrcp.f32 %v3348_v57  ;;  %v3362_v63 = vmul.f32 1.442695, %v3361_v60 }
 0xa88   : > { %4080 = vpow2.f32 %v3362_v63 }
 0xa90   : > { %v4079_v59 = vpop.eup %4078 }
 0xa91   : > { %v3351_v10 = vmul.f32 1.0614054, %v4079_v59 }
 0xa92   : > { %v4081_v4 = vpop.eup %4080 }
 0xa93   : > { %v3352_v62 = vadd.f32 -1.4531521, %v3351_v10 }
 0xa95   : > { %v3353_v0 = vmul.f32 %v4079_v59, %v3352_v62 }
 0xa97   : > { %v3354_v61 = vadd.f32 1.4214138, %v3353_v0 }
 0xa99   : > { %v3355_v1 = vmul.f32 %v4079_v59, %v3354_v61 }
 0xa9b   : > { %v3356_v43 = vadd.f32 -0.28449672, %v3355_v1 }
 0xa9d   : > { %v3357_v2 = vmul.f32 %v4079_v59, %v3356_v43 }
 0xa9f   : > { %v3358_v3 = vadd.f32 0.2548296, %v3357_v2 }
 0xaa1   : > { %v3359_v52 = vmul.f32 %v4079_v59, %v3358_v3 }
 0xaa3   : > { %v3364_v5 = vmul.f32 %v4081_v4, %v3359_v52 }
 0xaa5   : > { %v3365_v28 = vsub.f32 1.0, %v3364_v5 }
 0xaa7   : > { %v3367_v7 = vsub.f32 0.0, %v3365_v28 }
 0xaa9   : > { %v3368_v29 = vsel %vm3366_vm9, %v3367_v7, %v3365_v28 }
 0xaaa   : > { %v3369_v31 = vadd.f32 1.0, %v3368_v29 }
 0xaac   : > { %v3370_v9 = vmul.f32 %v3369_v31, %v3344_v8 }
 0xaae   : > { %3876 = vmatmul.mubr.msk.f32.vlgmr.msra.gmra.mrb[16].mxu0 %vm553_vm0, %v3370_v9 }
 0xb81   : > { %v3451_v12 = vpop.f32.mrb[16].mxu0 }
 0xb82   : > { %v3452_v15 = vadd.f32 %v3696_v11, %v3451_v12  ;;  %v3877_v16 = vpop.f32.mrb[17].mxu0 }
 0xb84   : > { %v3455_v17 = vadd.f32 %v3452_v15, %v5146_v18 }
 0xb86   : > { %3456 = vst.msk [vmem:[%s549_s12] sm:$0xff] %vm553_vm0, %v3455_v17 }
 0xb87   : > { %4322 = shalt.err (!%p4319_p10)
}
 0xb88   : > { %s4323_s21 = scalar_lea.hbm %s5181_s30, 128  ;;  %s4327_s24 = scalar_lea.hbm %s5273_s15, 256 }
 0xb89   : > { %p4324_p11 = scmp.ne.s32.totalorder %s5181_s30, %s4323_s21  ;;  %p4328_p9 = scmp.lt.u32.totalorder %s5181_s30, %s5273_s15 }
 0xb8a   : > { %p4329_p7 = scmp.lt.u32.totalorder %s4327_s24, %s4323_s21  ;;  %p4331_p12 = scmp.lt.u32.totalorder %s4323_s21, %s5181_s30 }
 0xb8b   : > { %p4325_p8 = pnand %p4324_p11, %p5274_p13 }
 0xb8c   : > { %p4330_p4 = por %p4329_p7, %p4328_p9 }
 0xb8d   : > { %p4326_p5 = pneg %p4325_p8 }
 0xb8e   : > { %p4332_p1 = por %p4331_p12, %p4330_p4 }
 0xb90   : > { %p4333_p3 = pnand %p4332_p1, %p4326_p5 }
 0xb92   : > { %4336 = shalt.err (!%p4333_p3)
}
 0xb93   : > { %3932 = dma.vmem_to_hbm [thread:$0]  (%p5274_p13), %s5183_s20, 128, %s5181_s30, %s3458_s14  }
 0xb94 PF: > { %s3483_s22 = sand.u32 1, %s4379_s25   ;;  %p5275_p2 = scmp.ne.s32.totalorder %s5258_s2, 0 }
 0xb95   : > { %p5276_p0 = scmp.ge.s32.totalorder %s4391_s28, 2  ;;  %s3484_s18 = scalar_lea.sflag [#allocation4], %s3483_s22 }
 0xb97   : > { %p3961_p6 = pnand %p5276_p0, %p5275_p2 }
 0xb99   : > { %4374 = dma.done.wait (!%p3961_p6), %s3484_s18, 128  }
 0xb9a   : > { %4376 = vsyncadd (!%p3961_p6), %s3484_s18, 4294967168  ;;  %p30_p10 = scmp.ge.s32.totalorder %s4699_s16, 4   ;;  %s5277_s25 = smov %s4383_s26 }
 0xb9b   : > { %s5278_s26 = smov %s4387_s27  ;;  %s5279_s27 = smov %s4711_s17 }
 0xb9c   : > { %s5280_s28 = smov %s4699_s16  ;;  %32 = sbr.rel (!%p30_p10) target bundleno = 15 (0xf), region = 145 }
 0xba3   :  { %3489 = vsyncpa [#allocation3], 1 }
 0xba4   :  { %3491 = vsyncpa [#allocation3 + $0x1], 1 }
 0xba5   :  { %3492 = vsyncpa [#allocation6], 1 }
 0xba6   :  { %3493 = vsyncpa [#allocation9], 1 }
 0xba7   :  { %3494 = vsyncpa [#allocation12], 1 }
 0xba8   :  { %3495 = vsyncpa [#allocation15], 1 }
 0xba9   :  { %3496 = vsyncpa [#allocation4], 1 }
 0xbaa   :  { %3498 = vsyncpa [#allocation4 + $0x1], 1 }

</bundles_post_ra>
